<compile_context>
chip_gen: v6e
topology: v6e:2x2x1
jax: 0.10.0
libtpu: 0.0.40
codegen_flags: <defaults>
</compile_context>

<pallas_src>
import functools

import jax
import jax.numpy as jnp
from jax import lax
from jax.experimental import pallas as pl
from jax.experimental.pallas import tpu as pltpu

HIDDEN = 256
GROUPS = 4
GROUP_SIZE = HIDDEN // GROUPS
EPS = 1e-5
NEG_SLOPE = 0.2
N_HIDDEN_LAYERS = 4


def _round_up(x, m):
    return -(-x // m) * m


@functools.lru_cache(maxsize=1)
def _num_tensorcores() -> int:
    """Trace-time TensorCore count; gates the megacore batch split."""
    try:
        dev = jax.devices()[0]
    except Exception:
        return 1
    n = getattr(dev, "num_cores", None)
    if isinstance(n, int) and n > 0:
        return n
    kind = str(getattr(dev, "device_kind", "")).lower()
    # v7x has 2 TensorCores per chip; v5e / v6e have 1.
    return 2 if "v7" in kind else 1


# ---------------------------------------------------------------------------
# Kernel
# ---------------------------------------------------------------------------
def _actor_kernel(obs_ref, w1_ref, wh_ref, wl_ref, vecs_ref, bl_ref,
                  mask_ref, maskt_ref, logits_ref):
    """vecs_ref rows: [0:4] biases, [4:8] gammas, [8:12] betas (one row / layer)."""
    mask = mask_ref[...]      # (256, 4)  f32, resident constant (channel -> group)
    mask_t = maskt_ref[...]   # (4, 256)  f32, resident constant (group -> channel)
    inv_gs = jnp.float32(1.0 / GROUP_SIZE)

    def hidden_block(x, w, layer):
        bias = vecs_ref[pl.ds(layer, 1), :]                     # (1, 256) f32
        gamma = vecs_ref[pl.ds(N_HIDDEN_LAYERS + layer, 1), :]  # (1, 256) f32
        beta = vecs_ref[pl.ds(2 * N_HIDDEN_LAYERS + layer, 1), :]

        # Linear: matmul-dtype (bf16 by default) inputs, f32 accumulation.
        h = jnp.dot(x.astype(w.dtype), w,
                    preferred_element_type=jnp.float32) + bias   # (bm, 256) f32
        bm = h.shape[0]

        # Group stats at group resolution (bm, 4) via MXU reductions.  h*h is
        # transient: it is consumed directly by its dot and dies immediately.
        gmean = jnp.dot(h, mask, preferred_element_type=jnp.float32) * inv_gs
        gmean2 = jnp.dot(h * h, mask, preferred_element_type=jnp.float32) * inv_gs
        # Biased variance, clamped >= 0 to guard the E[x^2]-E[x]^2 cancellation.
        gvar = jnp.maximum(gmean2 - gmean * gmean, 0.0)
        ginv = lax.rsqrt(gvar + EPS)                             # (bm, 4) — EUP at group level

        # ONE fused broadcast matmul: row-stack [ginv ; gmean*ginv] -> (2bm, 4),
        # multiply by mask_t (4, 256) -> [inv ; mean*inv], each (bm, 256).
        gcat = jnp.concatenate([ginv, gmean * ginv], axis=0)     # (2bm, 4)
        bc = jnp.dot(gcat, mask_t, preferred_element_type=jnp.float32)  # (2bm, 256)
        inv = bc[:bm]                                            # broadcast(ginv)
        mean_inv = bc[bm:]                                       # broadcast(mean*ginv)

        # GroupNorm + affine folded to a single FMA: y = h*scale + shift.
        scale = inv * gamma
        shift = beta - mean_inv * gamma
        y = h * scale + shift
        # LeakyReLU(0.2)
        return jnp.where(y >= 0.0, y, NEG_SLOPE * y)

    x = hidden_block(obs_ref[...], w1_ref[...], 0)
    for l in range(N_HIDDEN_LAYERS - 1):
        x = hidden_block(x, wh_ref[l], l + 1)

    wl = wl_ref[...]
    logits_ref[...] = (jnp.dot(x.astype(wl.dtype), wl,
                               preferred_element_type=jnp.float32)
                       + bl_ref[...]).astype(logits_ref.dtype)


# ---------------------------------------------------------------------------
# One-time parameter packing (hoisted out of the per-call path).
# ---------------------------------------------------------------------------
def prepare_params(params, *, matmul_dtype=jnp.bfloat16):
    """Pack/cast Actor_NN params once.  Returns (packed_dict, num_outputs)."""
    num_out = params["wl"].shape[1]
    n_pad = _round_up(num_out, 128)          # lane-dense logits tile

    w1 = params["w1"].astype(matmul_dtype)                                    # (obs_dim, 256)
    wh = jnp.stack([params["w2"], params["w3"], params["w4"]], axis=0
                   ).astype(matmul_dtype)                                     # (3, 256, 256)
    wl = jnp.pad(params["wl"], ((0, 0), (0, n_pad - num_out))
                 ).astype(matmul_dtype)                                       # (256, n_pad)
    bl = jnp.pad(params["bl"], ((0, 0), (0, n_pad - num_out)))                # (1, n_pad) f32
    vecs = jnp.concatenate(
        [params["b1"], params["b2"], params["b3"], params["b4"],
         params["g1"], params["g2"], params["g3"], params["g4"],
         params["be1"], params["be2"], params["be3"], params["be4"]],
        axis=0)                                                               # (12, 256) f32

    # Group-membership matrix and its transpose (resident VMEM constants).
    ch = jnp.arange(HIDDEN, dtype=jnp.int32) // GROUP_SIZE
    mask = (ch[:, None] == jnp.arange(GROUPS, dtype=jnp.int32)[None, :]
            ).astype(jnp.float32)                                             # (256, 4)
    mask_t = mask.T                                                           # (4, 256)

    packed = dict(w1=w1, wh=wh, wl=wl, vecs=vecs, bl=bl, mask=mask, mask_t=mask_t)
    return packed, num_out


# ---------------------------------------------------------------------------
# Forward wrapper
# ---------------------------------------------------------------------------
@functools.partial(jax.jit, static_argnames=("num_out", "block_m"))
def actor_forward(obs, packed, num_out, *, block_m=256):
    """obs: (B, OBS_DIM) f32.  packed: output of prepare_params.  -> (B, num_out) f32."""
    B, obs_dim = obs.shape
    n_pad = packed["wl"].shape[1]

    # ---- M tiling --------------------------------------------------------------
    B8 = _round_up(B, 8)
    bm = min(block_m, B8)
    n_tiles = -(-B8 // bm)
    # Megacore split: only worthwhile when the chip has >= 2 TensorCores (v7x)
    # AND each half-tile keeps >= 64 rows; otherwise the extra grid step is
    # pure ~600-cycle overhead (v5e/v6e single TC, or tiny batches on v7x).
    if n_tiles == 1 and B8 >= 128 and _num_tensorcores() >= 2:
        bm = _round_up(-(-B8 // 2), 8)
    B_pad = _round_up(B8, bm)
    if B_pad != B:
        obs = jnp.pad(obs, ((0, B_pad - B), (0, 0)))

    ordered = [packed["w1"], packed["wh"], packed["wl"], packed["vecs"],
               packed["bl"], packed["mask"], packed["mask_t"]]

    def full_spec(a):
        # Constant, fully-resident operands: index_map never changes, so the
        # DMA is issued once and the tile is simply revisited.  (They don't
        # need double buffers; pl.Buffered(1) would reclaim ~0.5 MB of VMEM.)
        return pl.BlockSpec(a.shape, lambda i, nd=a.ndim: (0,) * nd)

    grid = (B_pad // bm,)
    out = pl.pallas_call(
        _actor_kernel,
        out_shape=jax.ShapeDtypeStruct((B_pad, n_pad), jnp.float32),
        grid_spec=pltpu.PrefetchScalarGridSpec(
            num_scalar_prefetch=0,
            grid=grid,
            in_specs=[pl.BlockSpec((bm, obs_dim), lambda i: (i, 0))]
                     + [full_spec(a) for a in ordered],
            out_specs=pl.BlockSpec((bm, n_pad), lambda i: (i, 0)),
        ),
        compiler_params=pltpu.CompilerParams(
            dimension_semantics=("parallel",)),
    )(obs, *ordered)
    return out[:B, :num_out]


# ---------------------------------------------------------------------------
# Deterministic parameter init (mirrors the PyTorch module's __init__).
# ---------------------------------------------------------------------------
def xavier_uniform(key, fan_in, fan_out):
    bound = jnp.sqrt(6.0 / (fan_in + fan_out))
    # stored as (in, out) so the kernel computes x @ W
    return jax.random.uniform(key, (fan_in, fan_out), jnp.float32, -bound, bound)


def make_params(key, obs_dim, num_outputs):
    keys = jax.random.split(key, 14)
    p = {}
    # fc1..fc4: xavier-uniform weights, zero bias
    p["w1"] = xavier_uniform(keys[0], obs_dim, HIDDEN)
    p["w2"] = xavier_uniform(keys[1], HIDDEN, HIDDEN)
    p["w3"] = xavier_uniform(keys[2], HIDDEN, HIDDEN)
    p["w4"] = xavier_uniform(keys[3], HIDDEN, HIDDEN)
    for i in range(1, 5):
        p[f"b{i}"] = jnp.zeros((1, HIDDEN), jnp.float32)
    # GroupNorm affine params (PyTorch default gamma=1, beta=0) — perturbed
    # deterministically so the affine path is actually exercised.
    for i in range(1, 5):
        p[f"g{i}"] = 1.0 + 0.1 * jax.random.normal(keys[3 + i], (1, HIDDEN), jnp.float32)
        p[f"be{i}"] = 0.1 * jax.random.normal(keys[7 + i], (1, HIDDEN), jnp.float32)
    # to_logits: xavier-uniform weight, PyTorch-default uniform bias
    p["wl"] = xavier_uniform(keys[12], HIDDEN, num_outputs)
    bnd = 1.0 / jnp.sqrt(float(HIDDEN))
    p["bl"] = jax.random.uniform(keys[13], (1, num_outputs), jnp.float32, -bnd, bnd)
    return p
    # TODO(synk): value_branch (Linear(256,1)) is not part of forward(); value_function()
    # would be a second tiny matmul on the saved hidden activations.


# ---------------------------------------------------------------------------
# Pure-JAX reference for verification. matmul_dtype lets us check the bf16
# fast path against a bf16-simulated reference with a tight tolerance.
# ---------------------------------------------------------------------------
def reference_forward(obs, p, matmul_dtype=jnp.float32):
    def mm(x, w):
        return jnp.dot(x.astype(matmul_dtype), w.astype(matmul_dtype),
                       preferred_element_type=jnp.float32)

    def block(x, w, b, g, be):
        h = mm(x, w) + b
        hg = h.reshape(h.shape[0], GROUPS, GROUP_SIZE)
        mean = hg.mean(axis=-1, keepdims=True)
        var = hg.var(axis=-1, keepdims=True)
        xhat = ((hg - mean) / jnp.sqrt(var + EPS)).reshape(h.shape[0], HIDDEN)
        y = xhat * g + be
        return jnp.where(y >= 0, y, NEG_SLOPE * y)

    x = obs
    x = block(x, p["w1"], p["b1"], p["g1"], p["be1"])
    x = block(x, p["w2"], p["b2"], p["g2"], p["be2"])
    x = block(x, p["w3"], p["b3"], p["g3"], p["be3"])
    x = block(x, p["w4"], p["b4"], p["g4"], p["be4"])
    return mm(x, p["wl"]) + p["bl"]


if __name__ == "__main__":
    B = 16          # batch
    OBS_DIM = 32    # obs_space.shape[0]
    NUM_OUTPUTS = 16

    key = jax.random.PRNGKey(0)
    k_obs, k_par = jax.random.split(key)
    obs = jax.random.normal(k_obs, (B, OBS_DIM), jnp.float32)
    params = make_params(k_par, OBS_DIM, NUM_OUTPUTS)

    # 1) exact-semantics check: f32 matmuls vs. pure-f32 reference
    packed_f32, num_out = prepare_params(params, matmul_dtype=jnp.float32)
    logits_f32 = jax.block_until_ready(actor_forward(obs, packed_f32, num_out))
    ref_f32 = reference_forward(obs, params, jnp.float32)
    assert logits_f32.shape == (B, NUM_OUTPUTS)
    assert jnp.allclose(logits_f32, ref_f32, atol=5e-4, rtol=5e-4), "f32 mismatch vs reference"

    # 2) default fast path: bf16 matmul inputs (f32 accumulation) vs. bf16-sim reference
    packed_bf16, num_out = prepare_params(params)   # bf16 weights, packed once
    logits = jax.block_until_ready(actor_forward(obs, packed_bf16, num_out))
    ref_bf16 = reference_forward(obs, params, jnp.bfloat16)
    assert logits.shape == (B, NUM_OUTPUTS)
    assert jnp.allclose(logits, ref_bf16, atol=2e-3, rtol=2e-3), "bf16 mismatch vs reference"

    print("KERNEL_OK")
</pallas_src>

<mosaic_0001>
module attributes {stable_mosaic.version = 11 : i64} {
  func.func @_actor_kernel(%arg0: i32, %arg1: memref<16x32xf32, #tpu.memory_space<vmem>>, %arg2: memref<32x256xf32, #tpu.memory_space<vmem>>, %arg3: memref<3x256x256xf32, #tpu.memory_space<vmem>>, %arg4: memref<256x128xf32, #tpu.memory_space<vmem>>, %arg5: memref<12x256xf32, #tpu.memory_space<vmem>>, %arg6: memref<1x128xf32, #tpu.memory_space<vmem>>, %arg7: memref<256x4xf32, #tpu.memory_space<vmem>>, %arg8: memref<4x256xf32, #tpu.memory_space<vmem>>, %arg9: memref<16x128xf32, #tpu.memory_space<vmem>>) attributes {dimension_semantics = [#tpu.dimension_semantics<parallel>], iteration_bounds = array<i64: 1>, scalar_prefetch = 0 : i64, scratch_operands = 0 : i64, tpu.core_type = #tpu.core_type<tc>, window_params = [{transform_indices = @transform_0, window_bounds = array<i64: 16, 32>}, {pipeline_mode = #tpu.pipeline_mode<synchronous>, transform_indices = @transform_1, window_bounds = array<i64: 32, 256>}, {pipeline_mode = #tpu.pipeline_mode<synchronous>, transform_indices = @transform_2, window_bounds = array<i64: 3, 256, 256>}, {pipeline_mode = #tpu.pipeline_mode<synchronous>, transform_indices = @transform_3, window_bounds = array<i64: 256, 128>}, {pipeline_mode = #tpu.pipeline_mode<synchronous>, transform_indices = @transform_4, window_bounds = array<i64: 12, 256>}, {pipeline_mode = #tpu.pipeline_mode<synchronous>, transform_indices = @transform_5, window_bounds = array<i64: 1, 128>}, {pipeline_mode = #tpu.pipeline_mode<synchronous>, transform_indices = @transform_6, window_bounds = array<i64: 256, 4>}, {pipeline_mode = #tpu.pipeline_mode<synchronous>, transform_indices = @transform_7, window_bounds = array<i64: 4, 256>}, {transform_indices = @transform_8, window_bounds = array<i64: 16, 128>}]} {
    %c0 = arith.constant 0 : index
    %c0_0 = arith.constant 0 : index
    %0 = vector.load %arg7[%c0, %c0_0] : memref<256x4xf32, #tpu.memory_space<vmem>>, vector<256x4xf32>
    %c0_1 = arith.constant 0 : index
    %c0_2 = arith.constant 0 : index
    %1 = vector.load %arg8[%c0_1, %c0_2] : memref<4x256xf32, #tpu.memory_space<vmem>>, vector<4x256xf32>
    %c0_3 = arith.constant 0 : index
    %c0_4 = arith.constant 0 : index
    %2 = vector.load %arg1[%c0_3, %c0_4] : memref<16x32xf32, #tpu.memory_space<vmem>>, vector<16x32xf32>
    %c0_5 = arith.constant 0 : index
    %c0_6 = arith.constant 0 : index
    %3 = vector.load %arg2[%c0_5, %c0_6] : memref<32x256xf32, #tpu.memory_space<vmem>>, vector<32x256xf32>
    %c0_7 = arith.constant 0 : index
    %c0_8 = arith.constant 0 : index
    %4 = vector.load %arg5[%c0_7, %c0_8] : memref<12x256xf32, #tpu.memory_space<vmem>>, vector<1x256xf32>
    %c4 = arith.constant 4 : index
    %c0_9 = arith.constant 0 : index
    %5 = vector.load %arg5[%c4, %c0_9] : memref<12x256xf32, #tpu.memory_space<vmem>>, vector<1x256xf32>
    %c8 = arith.constant 8 : index
    %c0_10 = arith.constant 0 : index
    %6 = vector.load %arg5[%c8, %c0_10] : memref<12x256xf32, #tpu.memory_space<vmem>>, vector<1x256xf32>
    %cst = arith.constant dense<0.000000e+00> : vector<16x256xf32>
    %7 = tpu.matmul %2, %3, %cst {dimension_numbers = #tpu.dot_dimension_numbers<[1], [0], [0], [1], [0, 0, 1, 1], [], []>} : vector<16x32xf32>, vector<32x256xf32>, vector<16x256xf32> -> vector<16x256xf32>
    %8 = vector.broadcast %4 : vector<1x256xf32> to vector<16x256xf32>
    %9 = arith.addf %7, %8 : vector<16x256xf32>
    %cst_11 = arith.constant dense<0.000000e+00> : vector<16x4xf32>
    %10 = tpu.matmul %9, %0, %cst_11 {dimension_numbers = #tpu.dot_dimension_numbers<[1], [0], [0], [1], [0, 0, 1, 1], [], []>} : vector<16x256xf32>, vector<256x4xf32>, vector<16x4xf32> -> vector<16x4xf32>
    %cst_12 = arith.constant 1.562500e-02 : f32
    %11 = vector.broadcast %cst_12 : f32 to vector<16x4xf32>
    %12 = arith.mulf %10, %11 : vector<16x4xf32>
    %13 = arith.mulf %9, %9 : vector<16x256xf32>
    %cst_13 = arith.constant dense<0.000000e+00> : vector<16x4xf32>
    %14 = tpu.matmul %13, %0, %cst_13 {dimension_numbers = #tpu.dot_dimension_numbers<[1], [0], [0], [1], [0, 0, 1, 1], [], []>} : vector<16x256xf32>, vector<256x4xf32>, vector<16x4xf32> -> vector<16x4xf32>
    %cst_14 = arith.constant 1.562500e-02 : f32
    %15 = vector.broadcast %cst_14 : f32 to vector<16x4xf32>
    %16 = arith.mulf %14, %15 : vector<16x4xf32>
    %17 = arith.mulf %12, %12 : vector<16x4xf32>
    %18 = arith.subf %16, %17 : vector<16x4xf32>
    %cst_15 = arith.constant 0.000000e+00 : f32
    %19 = vector.broadcast %cst_15 : f32 to vector<16x4xf32>
    %20 = arith.maximumf %18, %19 : vector<16x4xf32>
    %cst_16 = arith.constant 9.99999974E-6 : f32
    %21 = vector.broadcast %cst_16 : f32 to vector<16x4xf32>
    %22 = arith.addf %20, %21 : vector<16x4xf32>
    %23 = math.rsqrt %22 : vector<16x4xf32>
    %24 = arith.mulf %12, %23 : vector<16x4xf32>
    %25 = tpu.concatenate %23, %24 in 0 : vector<16x4xf32>, vector<16x4xf32> -> vector<32x4xf32>
    %cst_17 = arith.constant dense<0.000000e+00> : vector<32x256xf32>
    %26 = tpu.matmul %25, %1, %cst_17 {dimension_numbers = #tpu.dot_dimension_numbers<[1], [0], [0], [1], [0, 0, 1, 1], [], []>} : vector<32x4xf32>, vector<4x256xf32>, vector<32x256xf32> -> vector<32x256xf32>
    %27 = vector.extract_strided_slice %26 {offsets = [0, 0], sizes = [16, 256], strides = [1, 1]} : vector<32x256xf32> to vector<16x256xf32>
    %28 = vector.extract_strided_slice %26 {offsets = [16, 0], sizes = [16, 256], strides = [1, 1]} : vector<32x256xf32> to vector<16x256xf32>
    %29 = vector.broadcast %5 : vector<1x256xf32> to vector<16x256xf32>
    %30 = arith.mulf %27, %29 : vector<16x256xf32>
    %31 = vector.broadcast %5 : vector<1x256xf32> to vector<16x256xf32>
    %32 = arith.mulf %28, %31 : vector<16x256xf32>
    %33 = vector.broadcast %6 : vector<1x256xf32> to vector<16x256xf32>
    %34 = arith.subf %33, %32 : vector<16x256xf32>
    %35 = arith.mulf %9, %30 : vector<16x256xf32>
    %36 = arith.addf %35, %34 : vector<16x256xf32>
    %cst_18 = arith.constant 0.000000e+00 : f32
    %37 = vector.broadcast %cst_18 : f32 to vector<16x256xf32>
    %38 = arith.cmpf oge, %36, %37 : vector<16x256xf32>
    %cst_19 = arith.constant 2.000000e-01 : f32
    %39 = vector.broadcast %cst_19 : f32 to vector<16x256xf32>
    %40 = arith.mulf %39, %36 : vector<16x256xf32>
    %41 = arith.select %38, %36, %40 : vector<16x256xi1>, vector<16x256xf32>
    %c0_20 = arith.constant 0 : index
    %c0_21 = arith.constant 0 : index
    %c0_22 = arith.constant 0 : index
    %42 = vector.load %arg3[%c0_20, %c0_21, %c0_22] : memref<3x256x256xf32, #tpu.memory_space<vmem>>, vector<1x256x256xf32>
    %43 = vector.shape_cast %42 : vector<1x256x256xf32> to vector<256x256xf32>
    %c1 = arith.constant 1 : index
    %c0_23 = arith.constant 0 : index
    %44 = vector.load %arg5[%c1, %c0_23] : memref<12x256xf32, #tpu.memory_space<vmem>>, vector<1x256xf32>
    %c5 = arith.constant 5 : index
    %c0_24 = arith.constant 0 : index
    %45 = vector.load %arg5[%c5, %c0_24] : memref<12x256xf32, #tpu.memory_space<vmem>>, vector<1x256xf32>
    %c9 = arith.constant 9 : index
    %c0_25 = arith.constant 0 : index
    %46 = vector.load %arg5[%c9, %c0_25] : memref<12x256xf32, #tpu.memory_space<vmem>>, vector<1x256xf32>
    %cst_26 = arith.constant dense<0.000000e+00> : vector<16x256xf32>
    %47 = tpu.matmul %41, %43, %cst_26 {dimension_numbers = #tpu.dot_dimension_numbers<[1], [0], [0], [1], [0, 0, 1, 1], [], []>} : vector<16x256xf32>, vector<256x256xf32>, vector<16x256xf32> -> vector<16x256xf32>
    %48 = vector.broadcast %44 : vector<1x256xf32> to vector<16x256xf32>
    %49 = arith.addf %47, %48 : vector<16x256xf32>
    %cst_27 = arith.constant dense<0.000000e+00> : vector<16x4xf32>
    %50 = tpu.matmul %49, %0, %cst_27 {dimension_numbers = #tpu.dot_dimension_numbers<[1], [0], [0], [1], [0, 0, 1, 1], [], []>} : vector<16x256xf32>, vector<256x4xf32>, vector<16x4xf32> -> vector<16x4xf32>
    %cst_28 = arith.constant 1.562500e-02 : f32
    %51 = vector.broadcast %cst_28 : f32 to vector<16x4xf32>
    %52 = arith.mulf %50, %51 : vector<16x4xf32>
    %53 = arith.mulf %49, %49 : vector<16x256xf32>
    %cst_29 = arith.constant dense<0.000000e+00> : vector<16x4xf32>
    %54 = tpu.matmul %53, %0, %cst_29 {dimension_numbers = #tpu.dot_dimension_numbers<[1], [0], [0], [1], [0, 0, 1, 1], [], []>} : vector<16x256xf32>, vector<256x4xf32>, vector<16x4xf32> -> vector<16x4xf32>
    %cst_30 = arith.constant 1.562500e-02 : f32
    %55 = vector.broadcast %cst_30 : f32 to vector<16x4xf32>
    %56 = arith.mulf %54, %55 : vector<16x4xf32>
    %57 = arith.mulf %52, %52 : vector<16x4xf32>
    %58 = arith.subf %56, %57 : vector<16x4xf32>
    %cst_31 = arith.constant 0.000000e+00 : f32
    %59 = vector.broadcast %cst_31 : f32 to vector<16x4xf32>
    %60 = arith.maximumf %58, %59 : vector<16x4xf32>
    %cst_32 = arith.constant 9.99999974E-6 : f32
    %61 = vector.broadcast %cst_32 : f32 to vector<16x4xf32>
    %62 = arith.addf %60, %61 : vector<16x4xf32>
    %63 = math.rsqrt %62 : vector<16x4xf32>
    %64 = arith.mulf %52, %63 : vector<16x4xf32>
    %65 = tpu.concatenate %63, %64 in 0 : vector<16x4xf32>, vector<16x4xf32> -> vector<32x4xf32>
    %cst_33 = arith.constant dense<0.000000e+00> : vector<32x256xf32>
    %66 = tpu.matmul %65, %1, %cst_33 {dimension_numbers = #tpu.dot_dimension_numbers<[1], [0], [0], [1], [0, 0, 1, 1], [], []>} : vector<32x4xf32>, vector<4x256xf32>, vector<32x256xf32> -> vector<32x256xf32>
    %67 = vector.extract_strided_slice %66 {offsets = [0, 0], sizes = [16, 256], strides = [1, 1]} : vector<32x256xf32> to vector<16x256xf32>
    %68 = vector.extract_strided_slice %66 {offsets = [16, 0], sizes = [16, 256], strides = [1, 1]} : vector<32x256xf32> to vector<16x256xf32>
    %69 = vector.broadcast %45 : vector<1x256xf32> to vector<16x256xf32>
    %70 = arith.mulf %67, %69 : vector<16x256xf32>
    %71 = vector.broadcast %45 : vector<1x256xf32> to vector<16x256xf32>
    %72 = arith.mulf %68, %71 : vector<16x256xf32>
    %73 = vector.broadcast %46 : vector<1x256xf32> to vector<16x256xf32>
    %74 = arith.subf %73, %72 : vector<16x256xf32>
    %75 = arith.mulf %49, %70 : vector<16x256xf32>
    %76 = arith.addf %75, %74 : vector<16x256xf32>
    %cst_34 = arith.constant 0.000000e+00 : f32
    %77 = vector.broadcast %cst_34 : f32 to vector<16x256xf32>
    %78 = arith.cmpf oge, %76, %77 : vector<16x256xf32>
    %cst_35 = arith.constant 2.000000e-01 : f32
    %79 = vector.broadcast %cst_35 : f32 to vector<16x256xf32>
    %80 = arith.mulf %79, %76 : vector<16x256xf32>
    %81 = arith.select %78, %76, %80 : vector<16x256xi1>, vector<16x256xf32>
    %c1_36 = arith.constant 1 : index
    %c0_37 = arith.constant 0 : index
    %c0_38 = arith.constant 0 : index
    %82 = vector.load %arg3[%c1_36, %c0_37, %c0_38] : memref<3x256x256xf32, #tpu.memory_space<vmem>>, vector<1x256x256xf32>
    %83 = vector.shape_cast %82 : vector<1x256x256xf32> to vector<256x256xf32>
    %c2 = arith.constant 2 : index
    %c0_39 = arith.constant 0 : index
    %84 = vector.load %arg5[%c2, %c0_39] : memref<12x256xf32, #tpu.memory_space<vmem>>, vector<1x256xf32>
    %c6 = arith.constant 6 : index
    %c0_40 = arith.constant 0 : index
    %85 = vector.load %arg5[%c6, %c0_40] : memref<12x256xf32, #tpu.memory_space<vmem>>, vector<1x256xf32>
    %c10 = arith.constant 10 : index
    %c0_41 = arith.constant 0 : index
    %86 = vector.load %arg5[%c10, %c0_41] : memref<12x256xf32, #tpu.memory_space<vmem>>, vector<1x256xf32>
    %cst_42 = arith.constant dense<0.000000e+00> : vector<16x256xf32>
    %87 = tpu.matmul %81, %83, %cst_42 {dimension_numbers = #tpu.dot_dimension_numbers<[1], [0], [0], [1], [0, 0, 1, 1], [], []>} : vector<16x256xf32>, vector<256x256xf32>, vector<16x256xf32> -> vector<16x256xf32>
    %88 = vector.broadcast %84 : vector<1x256xf32> to vector<16x256xf32>
    %89 = arith.addf %87, %88 : vector<16x256xf32>
    %cst_43 = arith.constant dense<0.000000e+00> : vector<16x4xf32>
    %90 = tpu.matmul %89, %0, %cst_43 {dimension_numbers = #tpu.dot_dimension_numbers<[1], [0], [0], [1], [0, 0, 1, 1], [], []>} : vector<16x256xf32>, vector<256x4xf32>, vector<16x4xf32> -> vector<16x4xf32>
    %cst_44 = arith.constant 1.562500e-02 : f32
    %91 = vector.broadcast %cst_44 : f32 to vector<16x4xf32>
    %92 = arith.mulf %90, %91 : vector<16x4xf32>
    %93 = arith.mulf %89, %89 : vector<16x256xf32>
    %cst_45 = arith.constant dense<0.000000e+00> : vector<16x4xf32>
    %94 = tpu.matmul %93, %0, %cst_45 {dimension_numbers = #tpu.dot_dimension_numbers<[1], [0], [0], [1], [0, 0, 1, 1], [], []>} : vector<16x256xf32>, vector<256x4xf32>, vector<16x4xf32> -> vector<16x4xf32>
    %cst_46 = arith.constant 1.562500e-02 : f32
    %95 = vector.broadcast %cst_46 : f32 to vector<16x4xf32>
    %96 = arith.mulf %94, %95 : vector<16x4xf32>
    %97 = arith.mulf %92, %92 : vector<16x4xf32>
    %98 = arith.subf %96, %97 : vector<16x4xf32>
    %cst_47 = arith.constant 0.000000e+00 : f32
    %99 = vector.broadcast %cst_47 : f32 to vector<16x4xf32>
    %100 = arith.maximumf %98, %99 : vector<16x4xf32>
    %cst_48 = arith.constant 9.99999974E-6 : f32
    %101 = vector.broadcast %cst_48 : f32 to vector<16x4xf32>
    %102 = arith.addf %100, %101 : vector<16x4xf32>
    %103 = math.rsqrt %102 : vector<16x4xf32>
    %104 = arith.mulf %92, %103 : vector<16x4xf32>
    %105 = tpu.concatenate %103, %104 in 0 : vector<16x4xf32>, vector<16x4xf32> -> vector<32x4xf32>
    %cst_49 = arith.constant dense<0.000000e+00> : vector<32x256xf32>
    %106 = tpu.matmul %105, %1, %cst_49 {dimension_numbers = #tpu.dot_dimension_numbers<[1], [0], [0], [1], [0, 0, 1, 1], [], []>} : vector<32x4xf32>, vector<4x256xf32>, vector<32x256xf32> -> vector<32x256xf32>
    %107 = vector.extract_strided_slice %106 {offsets = [0, 0], sizes = [16, 256], strides = [1, 1]} : vector<32x256xf32> to vector<16x256xf32>
    %108 = vector.extract_strided_slice %106 {offsets = [16, 0], sizes = [16, 256], strides = [1, 1]} : vector<32x256xf32> to vector<16x256xf32>
    %109 = vector.broadcast %85 : vector<1x256xf32> to vector<16x256xf32>
    %110 = arith.mulf %107, %109 : vector<16x256xf32>
    %111 = vector.broadcast %85 : vector<1x256xf32> to vector<16x256xf32>
    %112 = arith.mulf %108, %111 : vector<16x256xf32>
    %113 = vector.broadcast %86 : vector<1x256xf32> to vector<16x256xf32>
    %114 = arith.subf %113, %112 : vector<16x256xf32>
    %115 = arith.mulf %89, %110 : vector<16x256xf32>
    %116 = arith.addf %115, %114 : vector<16x256xf32>
    %cst_50 = arith.constant 0.000000e+00 : f32
    %117 = vector.broadcast %cst_50 : f32 to vector<16x256xf32>
    %118 = arith.cmpf oge, %116, %117 : vector<16x256xf32>
    %cst_51 = arith.constant 2.000000e-01 : f32
    %119 = vector.broadcast %cst_51 : f32 to vector<16x256xf32>
    %120 = arith.mulf %119, %116 : vector<16x256xf32>
    %121 = arith.select %118, %116, %120 : vector<16x256xi1>, vector<16x256xf32>
    %c2_52 = arith.constant 2 : index
    %c0_53 = arith.constant 0 : index
    %c0_54 = arith.constant 0 : index
    %122 = vector.load %arg3[%c2_52, %c0_53, %c0_54] : memref<3x256x256xf32, #tpu.memory_space<vmem>>, vector<1x256x256xf32>
    %123 = vector.shape_cast %122 : vector<1x256x256xf32> to vector<256x256xf32>
    %c3 = arith.constant 3 : index
    %c0_55 = arith.constant 0 : index
    %124 = vector.load %arg5[%c3, %c0_55] : memref<12x256xf32, #tpu.memory_space<vmem>>, vector<1x256xf32>
    %c7 = arith.constant 7 : index
    %c0_56 = arith.constant 0 : index
    %125 = vector.load %arg5[%c7, %c0_56] : memref<12x256xf32, #tpu.memory_space<vmem>>, vector<1x256xf32>
    %c11 = arith.constant 11 : index
    %c0_57 = arith.constant 0 : index
    %126 = vector.load %arg5[%c11, %c0_57] : memref<12x256xf32, #tpu.memory_space<vmem>>, vector<1x256xf32>
    %cst_58 = arith.constant dense<0.000000e+00> : vector<16x256xf32>
    %127 = tpu.matmul %121, %123, %cst_58 {dimension_numbers = #tpu.dot_dimension_numbers<[1], [0], [0], [1], [0, 0, 1, 1], [], []>} : vector<16x256xf32>, vector<256x256xf32>, vector<16x256xf32> -> vector<16x256xf32>
    %128 = vector.broadcast %124 : vector<1x256xf32> to vector<16x256xf32>
    %129 = arith.addf %127, %128 : vector<16x256xf32>
    %cst_59 = arith.constant dense<0.000000e+00> : vector<16x4xf32>
    %130 = tpu.matmul %129, %0, %cst_59 {dimension_numbers = #tpu.dot_dimension_numbers<[1], [0], [0], [1], [0, 0, 1, 1], [], []>} : vector<16x256xf32>, vector<256x4xf32>, vector<16x4xf32> -> vector<16x4xf32>
    %cst_60 = arith.constant 1.562500e-02 : f32
    %131 = vector.broadcast %cst_60 : f32 to vector<16x4xf32>
    %132 = arith.mulf %130, %131 : vector<16x4xf32>
    %133 = arith.mulf %129, %129 : vector<16x256xf32>
    %cst_61 = arith.constant dense<0.000000e+00> : vector<16x4xf32>
    %134 = tpu.matmul %133, %0, %cst_61 {dimension_numbers = #tpu.dot_dimension_numbers<[1], [0], [0], [1], [0, 0, 1, 1], [], []>} : vector<16x256xf32>, vector<256x4xf32>, vector<16x4xf32> -> vector<16x4xf32>
    %cst_62 = arith.constant 1.562500e-02 : f32
    %135 = vector.broadcast %cst_62 : f32 to vector<16x4xf32>
    %136 = arith.mulf %134, %135 : vector<16x4xf32>
    %137 = arith.mulf %132, %132 : vector<16x4xf32>
    %138 = arith.subf %136, %137 : vector<16x4xf32>
    %cst_63 = arith.constant 0.000000e+00 : f32
    %139 = vector.broadcast %cst_63 : f32 to vector<16x4xf32>
    %140 = arith.maximumf %138, %139 : vector<16x4xf32>
    %cst_64 = arith.constant 9.99999974E-6 : f32
    %141 = vector.broadcast %cst_64 : f32 to vector<16x4xf32>
    %142 = arith.addf %140, %141 : vector<16x4xf32>
    %143 = math.rsqrt %142 : vector<16x4xf32>
    %144 = arith.mulf %132, %143 : vector<16x4xf32>
    %145 = tpu.concatenate %143, %144 in 0 : vector<16x4xf32>, vector<16x4xf32> -> vector<32x4xf32>
    %cst_65 = arith.constant dense<0.000000e+00> : vector<32x256xf32>
    %146 = tpu.matmul %145, %1, %cst_65 {dimension_numbers = #tpu.dot_dimension_numbers<[1], [0], [0], [1], [0, 0, 1, 1], [], []>} : vector<32x4xf32>, vector<4x256xf32>, vector<32x256xf32> -> vector<32x256xf32>
    %147 = vector.extract_strided_slice %146 {offsets = [0, 0], sizes = [16, 256], strides = [1, 1]} : vector<32x256xf32> to vector<16x256xf32>
    %148 = vector.extract_strided_slice %146 {offsets = [16, 0], sizes = [16, 256], strides = [1, 1]} : vector<32x256xf32> to vector<16x256xf32>
    %149 = vector.broadcast %125 : vector<1x256xf32> to vector<16x256xf32>
    %150 = arith.mulf %147, %149 : vector<16x256xf32>
    %151 = vector.broadcast %125 : vector<1x256xf32> to vector<16x256xf32>
    %152 = arith.mulf %148, %151 : vector<16x256xf32>
    %153 = vector.broadcast %126 : vector<1x256xf32> to vector<16x256xf32>
    %154 = arith.subf %153, %152 : vector<16x256xf32>
    %155 = arith.mulf %129, %150 : vector<16x256xf32>
    %156 = arith.addf %155, %154 : vector<16x256xf32>
    %cst_66 = arith.constant 0.000000e+00 : f32
    %157 = vector.broadcast %cst_66 : f32 to vector<16x256xf32>
    %158 = arith.cmpf oge, %156, %157 : vector<16x256xf32>
    %cst_67 = arith.constant 2.000000e-01 : f32
    %159 = vector.broadcast %cst_67 : f32 to vector<16x256xf32>
    %160 = arith.mulf %159, %156 : vector<16x256xf32>
    %161 = arith.select %158, %156, %160 : vector<16x256xi1>, vector<16x256xf32>
    %c0_68 = arith.constant 0 : index
    %c0_69 = arith.constant 0 : index
    %162 = vector.load %arg4[%c0_68, %c0_69] : memref<256x128xf32, #tpu.memory_space<vmem>>, vector<256x128xf32>
    %cst_70 = arith.constant dense<0.000000e+00> : vector<16x128xf32>
    %163 = tpu.matmul %161, %162, %cst_70 {dimension_numbers = #tpu.dot_dimension_numbers<[1], [0], [0], [1], [0, 0, 1, 1], [], []>} : vector<16x256xf32>, vector<256x128xf32>, vector<16x128xf32> -> vector<16x128xf32>
    %c0_71 = arith.constant 0 : index
    %c0_72 = arith.constant 0 : index
    %164 = vector.load %arg6[%c0_71, %c0_72] : memref<1x128xf32, #tpu.memory_space<vmem>>, vector<1x128xf32>
    %165 = vector.broadcast %164 : vector<1x128xf32> to vector<16x128xf32>
    %166 = arith.addf %163, %165 : vector<16x128xf32>
    %c0_73 = arith.constant 0 : index
    %c0_74 = arith.constant 0 : index
    %167 = vector.load %arg9[%c0_73, %c0_74] : memref<16x128xf32, #tpu.memory_space<vmem>>, vector<16x128xf32>
    tpu.vector_store %arg9[%c0_73, %c0_74], %166 {strides = array<i32>} : memref<16x128xf32, #tpu.memory_space<vmem>>, vector<16x128xf32>,
    return
  }
  func.func @transform_0(%arg0: i32) -> (i32, i32) {
    %c0_i32 = arith.constant 0 : i32
    %c0_i32_0 = arith.constant 0 : i32
    return %arg0, %c0_i32 : i32, i32
  }
  func.func @transform_1(%arg0: i32) -> (i32, i32) {
    %c0_i32 = arith.constant 0 : i32
    %c0_i32_0 = arith.constant 0 : i32
    %c0_i32_1 = arith.constant 0 : i32
    return %c0_i32, %c0_i32_0 : i32, i32
  }
  func.func @transform_2(%arg0: i32) -> (i32, i32, i32) {
    %c0_i32 = arith.constant 0 : i32
    %c0_i32_0 = arith.constant 0 : i32
    %c0_i32_1 = arith.constant 0 : i32
    %c0_i32_2 = arith.constant 0 : i32
    return %c0_i32, %c0_i32_0, %c0_i32_1 : i32, i32, i32
  }
  func.func @transform_3(%arg0: i32) -> (i32, i32) {
    %c0_i32 = arith.constant 0 : i32
    %c0_i32_0 = arith.constant 0 : i32
    %c0_i32_1 = arith.constant 0 : i32
    return %c0_i32, %c0_i32_0 : i32, i32
  }
  func.func @transform_4(%arg0: i32) -> (i32, i32) {
    %c0_i32 = arith.constant 0 : i32
    %c0_i32_0 = arith.constant 0 : i32
    %c0_i32_1 = arith.constant 0 : i32
    return %c0_i32, %c0_i32_0 : i32, i32
  }
  func.func @transform_5(%arg0: i32) -> (i32, i32) {
    %c0_i32 = arith.constant 0 : i32
    %c0_i32_0 = arith.constant 0 : i32
    %c0_i32_1 = arith.constant 0 : i32
    return %c0_i32, %c0_i32_0 : i32, i32
  }
  func.func @transform_6(%arg0: i32) -> (i32, i32) {
    %c0_i32 = arith.constant 0 : i32
    %c0_i32_0 = arith.constant 0 : i32
    %c0_i32_1 = arith.constant 0 : i32
    return %c0_i32, %c0_i32_0 : i32, i32
  }
  func.func @transform_7(%arg0: i32) -> (i32, i32) {
    %c0_i32 = arith.constant 0 : i32
    %c0_i32_0 = arith.constant 0 : i32
    %c0_i32_1 = arith.constant 0 : i32
    return %c0_i32, %c0_i32_0 : i32, i32
  }
  func.func @transform_8(%arg0: i32) -> (i32, i32) {
    %c0_i32 = arith.constant 0 : i32
    %c0_i32_0 = arith.constant 0 : i32
    return %arg0, %c0_i32 : i32, i32
  }
}

</mosaic_0001>

<bundles_post_ra>
// kernel: actor_forward.1
= control target key start
LH: loop header
LB: loop body
LE: loop exit
PB: predicated region body
PF: predicated region fallthrough
CT: control target
= control target key end

     0   :  { %13 = vsyncpa [#allocation3], 0  ;;  %s3617_s0 = inlined_call_operand.vmem [shape: f32[16,32], index: 0, kind: input, shape index: {}]   ;;  %s3618_s1 = inlined_call_operand.hbm [shape: f32[32,256], index: 1, kind: input, shape index: {}]   ;;  %s3619_s2 = inlined_call_operand.hbm [shape: f32[3,256,256], index: 2, kind: input, shape index: {}]   ;;  %s3620_s3 = inlined_call_operand.vmem [shape: f32[256,128], index: 3, kind: input, shape index: {}]   ;;  %s3621_s4 = inlined_call_operand.hbm [shape: f32[12,256], index: 4, kind: input, shape index: {}]   ;;  %s3622_s5 = inlined_call_operand.vmem [shape: f32[1,128], index: 5, kind: input, shape index: {}]   ;;  %s3623_s6 = inlined_call_operand.vmem [shape: f32[256,4], index: 6, kind: input, shape index: {}]   ;;  %s3624_s7 = inlined_call_operand.hbm [shape: f32[4,256], index: 7, kind: input, shape index: {}]   ;;  %s3625_s8 = inlined_call_operand.hbm [shape: f32[16,128], index: 8, kind: output, shape index: {}]  }
   0x1   :  { %14 = vsyncpa [#allocation6], 0 }
   0x2   :  { %15 = vsyncpa [#allocation9], 0 }
   0x3   :  { %16 = vsyncpa [#allocation4], 0  ;;  %s2682_s27 = smov [#allocation5]   ;;  %s2683_s29 = smov [#allocation2]  }
   0x4   :  { %s36_s28 = sshll.u32 %s2682_s27, 4  ;;  %s24_s30 = sshll.u32 %s2683_s29, 4  ;;  %s37_s28 = int_to_ptr.vmem [resolvable:$true] %s36_s28  ;;  %s25_s30 = int_to_ptr.vmem [resolvable:$true] %s24_s30 }
   0x5   :  { %s2582_s9 = scalar_lea.vmem %s37_s28, 24576  ;;  %p2587_p1 = scmp.lt.s32.totalorder %s37_s28, %s37_s28 }
   0x6   :  { %p2583_p0 = scmp.ne.s32.totalorder %s37_s28, %s2582_s9  ;;  %p2588_p2 = scmp.lt.s32.totalorder %s2582_s9, %s2582_s9 }
   0x8   :  { %p2589_p3 = por %p2588_p2, %p2587_p1 }
   0xa   :  { %p2590_p4 = pnand %p2589_p3, %p2583_p0 }
   0xc   :  { %2593 = shalt.err (!%p2590_p4)
}
   0xd   :  { %s2684_s10 = smov 256   ;;  %s2685_s11 = smov 16  }
   0xe   :  { %42 = dma.hbm_to_vmem [thread:$0]  %s3619_s2, 24576, %s37_s28, [#allocation6], %s2684_s10, %s2684_s10, %s2685_s11  }
   0xf   :  { %s2602_s14 = scalar_lea.vmem %s25_s30, 1024  ;;  %p2607_p6 = scmp.lt.s32.totalorder %s25_s30, %s25_s30 }
  0x10   :  { %p2603_p5 = scmp.ne.s32.totalorder %s25_s30, %s2602_s14  ;;  %p2608_p7 = scmp.lt.s32.totalorder %s2602_s14, %s2602_s14 }
  0x12   :  { %p2609_p8 = por %p2608_p7, %p2607_p6 }
  0x14   :  { %p2610_p9 = pnand %p2609_p8, %p2603_p5 }
  0x16   :  { %2613 = shalt.err (!%p2610_p9)
}
  0x17   :  { %30 = dma.hbm_to_vmem [thread:$0]  %s3618_s1, 1024, %s25_s30, [#allocation3], %s2684_s10, %s2684_s10, %s2685_s11  }
  0x18   :  { %s2686_s17 = smov [#allocation7]   ;;  %s2687_s19 = smov [#allocation8]  }
  0x19   :  { %s50_s18 = sshll.u32 %s2686_s17, 4  ;;  %s67_s20 = sshll.u32 %s2687_s19, 4  ;;  %s51_s18 = int_to_ptr.vmem [resolvable:$true] %s50_s18  ;;  %s68_s20 = int_to_ptr.vmem [resolvable:$true] %s67_s20 }
  0x1a   :  { %s2622_s21 = scalar_lea.vmem %s51_s18, 512  ;;  %p2627_p11 = scmp.lt.s32.totalorder %s51_s18, %s51_s18 }
  0x1b   :  { %p2623_p10 = scmp.ne.s32.totalorder %s51_s18, %s2622_s21  ;;  %p2628_p12 = scmp.lt.s32.totalorder %s2622_s21, %s2622_s21 }
  0x1d   :  { %p2629_p13 = por %p2628_p12, %p2627_p11 }
  0x1f   :  { %p2630_p0 = pnand %p2629_p13, %p2623_p10 }
  0x21   :  { %2633 = shalt.err (!%p2630_p0)
}
  0x22   :  { %56 = dma.hbm_to_vmem [thread:$0]  %s3621_s4, 512, %s51_s18, [#allocation6], %s2684_s10, %s2684_s10, %s2685_s11  }
  0x23   :  { %s2642_s23 = scalar_lea.vmem %s68_s20, 128  ;;  %p2647_p2 = scmp.lt.s32.totalorder %s68_s20, %s68_s20 }
  0x24   :  { %p2643_p1 = scmp.ne.s32.totalorder %s68_s20, %s2642_s23  ;;  %p2648_p3 = scmp.lt.s32.totalorder %s2642_s23, %s2642_s23 }
  0x26   :  { %p2649_p4 = por %p2648_p3, %p2647_p2 }
  0x28   :  { %p2650_p5 = pnand %p2649_p4, %p2643_p1 }
  0x2a   :  { %2653 = shalt.err (!%p2650_p5)
}
  0x2b   :  { %70 = dma.hbm_to_vmem [thread:$0]  %s3624_s7, 128, %s68_s20, [#allocation9]  }
  0x2c   :  { %2674 = dma.done.wait [#allocation3], 1024  }
  0x2d   :  { %2675 = vsyncadd [#allocation3], 4294966272 }
  0x2e   :  { %2676 = dma.done.wait [#allocation6], 25088  }
  0x2f   :  { %2677 = vsyncadd [#allocation6], 4294942208 }
  0x30   :  { %2678 = dma.done.wait [#allocation9], 128  }
  0x31   :  { %2679 = vsyncadd [#allocation9], 4294967168  ;;  %v3626_v0 = vmov 0.0   ;;  %v125_v1 = vld [vmem:[#allocation2 + $0x38] sm:$0xff]  ;;  %v124_v2 = vld [vmem:[#allocation2 + $0x30] sm:$0xff]  ;;  %vm142_vm0 = vcmask 261120   ;;  %v132_v43 = vlaneseq }
  0x32   :  { %213 = vmatprep.mubr.f32.mxu0 %v3626_v0  ;;  %v123_v3 = vld [vmem:[#allocation2 + $0x28] sm:$0xff]  ;;  %173 = vmatprep.subr.mxu0 %v125_v1  ;;  %v122_v4 = vld [vmem:[#allocation2 + $0x20] sm:$0xff]  ;;  %v121_v5 = vld [vmem:[#allocation2 + $0x18] sm:$0xff]  ;;  %vm411_vm1 = vcmask 1043456   ;;  %vm398_vm2 = vcmask 31744   ;;  %s2689_s28 = smov [#allocation10]  }
  0x33   :  { %174 = vmatpush1.msra.mxu0 %v124_v2  ;;  %v120_v6 = vld [vmem:[#allocation2 + $0x10] sm:$0xff]  ;;  %v2753_v7 = vld [vmem:[%s3623_s6 + $0xf8] sm:$0xff]  ;;  %v119_v9 = vld [vmem:[#allocation2 + $0x8] sm:$0xff]  ;;  %v133_v44 = vshrl.u32 %v132_v43, 7  ;;  %s2131_s29 = sshll.u32 %s2689_s28, 4  ;;  %s2132_s29 = int_to_ptr.vmem [resolvable:$true] %s2131_s29 }
  0x34   :  { %175 = vmatprep.subr.mxu0 %v123_v3  ;;  %v2758_v8 = vld [vmem:[%s3623_s6 + $0x78] sm:$0xff]  ;;  %2172 = vmatprep.subr.mxu1 %v2753_v7  ;;  %v2764_v10 = vld [vmem:[%s3623_s6 + $0xf0] sm:$0xff]  ;;  %v118_v12 = vld [vmem:[#allocation2] sm:$0xff]  ;;  %s2654_s30 = scalar_lea.vmem %s2132_s29, 256  ;;  %p2659_p7 = scmp.lt.s32.totalorder %s2132_s29, %s2132_s29 }
  0x35   :  { %176 = vmatpush1.msra.mxu0 %v122_v4  ;;  %v2769_v11 = vld [vmem:[%s3623_s6 + $0x70] sm:$0xff]  ;;  %2173 = vmatpush3.msra.mxu1 %v2758_v8  ;;  %v2775_v13 = vld [vmem:[%s3623_s6 + $0xe8] sm:$0xff]  ;;  %v116_v14 = vld [vmem:[%s3617_s0] sm:$0xff]  ;;  %v2984_v45 = vsub.s32 0, %v133_v44  ;;  %v2986_v47 = vsub.s32 1, %v133_v44  ;;  %p2655_p6 = scmp.ne.s32.totalorder %s2132_s29, %s2654_s30  ;;  %p2660_p8 = scmp.lt.s32.totalorder %s2654_s30, %s2654_s30 }
  0x36   :  { %177 = vmatprep.subr.mxu0 %v121_v5  ;;  %2174 = vmatprep.subr.mxu1 %v2764_v10  ;;  %v2786_v15 = vld [vmem:[%s3623_s6 + $0x68] sm:$0xff]  ;;  %v2793_v16 = vld [vmem:[%s3623_s6 + $0xe0] sm:$0xff]  ;;  %v2812_v19 = vld [vmem:[%s3623_s6 + $0xd8] sm:$0xff] }
  0x37   :  { %178 = vmatpush1.msra.mxu0 %v120_v6  ;;  %2175 = vmatpush3.msra.mxu1 %v2769_v11  ;;  %v117_v17 = vld [vmem:[%s3617_s0 + $0x8] sm:$0xff]  ;;  %v2805_v18 = vld [vmem:[%s3623_s6 + $0x60] sm:$0xff]  ;;  %v2819_v20 = vld [vmem:[%s3623_s6 + $0x58] sm:$0xff]  ;;  %p2661_p9 = por %p2660_p8, %p2659_p7 }
  0x38   :  { %179 = vmatprep.subr.mxu0 %v119_v9  ;;  %2176 = vmatprep.subr.mxu1 %v2775_v13  ;;  %v2826_v21 = vld [vmem:[%s3623_s6 + $0xd0] sm:$0xff]  ;;  %v2840_v23 = vld [vmem:[%s3623_s6 + $0xc8] sm:$0xff]  ;;  %v2854_v25 = vld [vmem:[%s3623_s6 + $0xc0] sm:$0xff] }
  0x39   :  { %180 = vmatpush1.msra.mxu0 %v118_v12  ;;  %2177 = vmatpush3.msra.mxu1 %v2786_v15  ;;  %v2833_v22 = vld [vmem:[%s3623_s6 + $0x50] sm:$0xff]  ;;  %v2847_v24 = vld [vmem:[%s3623_s6 + $0x48] sm:$0xff]  ;;  %v2861_v26 = vld [vmem:[%s3623_s6 + $0x40] sm:$0xff]  ;;  %p2662_p10 = pnand %p2661_p9, %p2655_p6 }
  0x3a   :  { %2145 = vmatmul.mubr.msk.f32.vlgmr.msra.gmra.mxu0 %vm142_vm0, %v116_v14  ;;  %2210 = vmatprep.subr.mxu0 %v2753_v7  ;;  %v2868_v27 = vld [vmem:[%s3623_s6 + $0xb8] sm:$0xff]  ;;  %v2882_v29 = vld [vmem:[%s3623_s6 + $0xb0] sm:$0xff]  ;;  %v2896_v31 = vld [vmem:[%s3623_s6 + $0xa8] sm:$0xff] }
  0x3b   :  { %219 = vmatprep.mubr.f32.mxu0 %v3626_v0  ;;  %2211 = vmatpush3.msra.mxu0 %v2758_v8  ;;  %v2875_v28 = vld [vmem:[%s3623_s6 + $0x38] sm:$0xff]  ;;  %v2889_v30 = vld [vmem:[%s3623_s6 + $0x30] sm:$0xff]  ;;  %v2903_v32 = vld [vmem:[%s3623_s6 + $0x28] sm:$0xff] }
  0x3c   :  { %2212 = vmatprep.subr.mxu0 %v2764_v10  ;;  %2178 = vmatprep.subr.mxu1 %v2793_v16  ;;  %v2910_v33 = vld [vmem:[%s3623_s6 + $0xa0] sm:$0xff]  ;;  %v2924_v35 = vld [vmem:[%s3623_s6 + $0x98] sm:$0xff]  ;;  %v2944_v37 = vld [vmem:[%s3623_s6 + $0x90] sm:$0xff] }
  0x3d   :  { %2213 = vmatpush3.msra.mxu0 %v2769_v11  ;;  %2179 = vmatpush3.msra.mxu1 %v2805_v18  ;;  %v2917_v34 = vld [vmem:[%s3623_s6 + $0x20] sm:$0xff]  ;;  %v2931_v36 = vld [vmem:[%s3623_s6 + $0x18] sm:$0xff]  ;;  %v2950_v38 = vld [vmem:[%s3623_s6 + $0x10] sm:$0xff] }
  0x3e   :  { %2146 = vmatmul.mubr.msk.f32.gmra.mxu0 %vm142_vm0, %v117_v17  ;;  %2214 = vmatprep.subr.mxu0 %v2775_v13  ;;  %v2957_v39 = vld [vmem:[%s3623_s6 + $0x88] sm:$0xff]  ;;  %v2971_v41 = vld [vmem:[%s3623_s6 + $0x80] sm:$0xff]  ;;  %v590_v1 = vld [vmem:[#allocation5 + $0xf8] sm:$0xff] }
  0x3f   :  { %2215 = vmatpush3.msra.mxu0 %v2786_v15  ;;  %2180 = vmatprep.subr.mxu1 %v2812_v19  ;;  %v2964_v40 = vld [vmem:[%s3623_s6 + $0x8] sm:$0xff]  ;;  %3636 = vst [vmem:[#allocation15_spill] sm:$0xff] %v2971_v41  ;;  %v2978_v42 = vld [vmem:[%s3623_s6] sm:$0xff] }
  0x40   :  { %2216 = vmatprep.subr.mxu0 %v2793_v16  ;;  %2181 = vmatpush3.msra.mxu1 %v2819_v20  ;;  %3637 = vst [vmem:[#allocation16_spill] sm:$0xff] %v2978_v42  ;;  %v126_v46 = vld [vmem:[#allocation7] ss:$8 sm:$0x3] }
  0x41   :  { %2217 = vmatpush3.msra.mxu0 %v2805_v18  ;;  %2182 = vmatprep.subr.mxu1 %v2826_v21  ;;  %v135_v48 = vrot.slane %v126_v46, %v2984_v45  ;;  %v139_v49 = vrot.slane %v126_v46, %v2986_v47  ;;  %v3043_v62 = vld [vmem:[#allocation8] sm:$0xff] }
  0x42   :  { %2218 = vmatprep.subr.mxu0 %v2812_v19  ;;  %2183 = vmatpush3.msra.mxu1 %v2833_v22  ;;  %v3047_v63 = vcombine.high %v3043_v62, %v3043_v62 }
  0x43   :  { %2219 = vmatpush3.msra.mxu0 %v2819_v20  ;;  %2184 = vmatprep.subr.mxu1 %v2840_v23 }
  0x44   :  { %2220 = vmatprep.subr.mxu0 %v2826_v21  ;;  %2185 = vmatpush3.msra.mxu1 %v2847_v24  ;;  %3638 = vst [vmem:[#allocation17_spill] sm:$0xff] %v3047_v63 }
  0x45   :  { %2221 = vmatpush3.msra.mxu0 %v2833_v22  ;;  %2186 = vmatprep.subr.mxu1 %v2854_v25 }
  0x46   :  { %2222 = vmatprep.subr.mxu0 %v2840_v23  ;;  %2187 = vmatpush3.msra.mxu1 %v2861_v26 }
  0x47   :  { %2223 = vmatpush3.msra.mxu0 %v2847_v24  ;;  %2188 = vmatprep.subr.mxu1 %v2868_v27 }
  0x48   :  { %2224 = vmatprep.subr.mxu0 %v2854_v25  ;;  %2189 = vmatpush3.msra.mxu1 %v2875_v28 }
  0x49   :  { %2225 = vmatpush3.msra.mxu0 %v2861_v26  ;;  %2190 = vmatprep.subr.mxu1 %v2882_v29 }
  0x4a   :  { %2226 = vmatprep.subr.mxu0 %v2868_v27  ;;  %2191 = vmatpush3.msra.mxu1 %v2889_v30 }
  0x4b   :  { %2227 = vmatpush3.msra.mxu0 %v2875_v28  ;;  %2192 = vmatprep.subr.mxu1 %v2896_v31 }
  0x4c   :  { %2228 = vmatprep.subr.mxu0 %v2882_v29  ;;  %2193 = vmatpush3.msra.mxu1 %v2903_v32 }
  0x4d   :  { %2229 = vmatpush3.msra.mxu0 %v2889_v30  ;;  %2194 = vmatprep.subr.mxu1 %v2910_v33 }
  0x4e   :  { %2230 = vmatprep.subr.mxu0 %v2896_v31  ;;  %2195 = vmatpush3.msra.mxu1 %v2917_v34 }
  0x4f   :  { %2231 = vmatpush3.msra.mxu0 %v2903_v32  ;;  %2196 = vmatprep.subr.mxu1 %v2924_v35 }
  0x50   :  { %2232 = vmatprep.subr.mxu0 %v2910_v33  ;;  %2197 = vmatpush3.msra.mxu1 %v2931_v36 }
  0x51   :  { %2233 = vmatpush3.msra.mxu0 %v2917_v34  ;;  %2198 = vmatprep.subr.mxu1 %v2944_v37 }
  0x52   :  { %2234 = vmatprep.subr.mxu0 %v2924_v35  ;;  %2199 = vmatpush3.msra.mxu1 %v2950_v38 }
  0x53   :  { %2235 = vmatpush3.msra.mxu0 %v2931_v36  ;;  %2200 = vmatprep.subr.mxu1 %v2957_v39 }
  0x54   :  { %2236 = vmatprep.subr.mxu0 %v2944_v37  ;;  %2201 = vmatpush3.msra.mxu1 %v2964_v40 }
  0x55   :  { %2237 = vmatpush3.msra.mxu0 %v2950_v38  ;;  %2202 = vmatprep.subr.mxu1 %v2971_v41 }
  0x56   :  { %2238 = vmatprep.subr.mxu0 %v2957_v39  ;;  %2203 = vmatpush3.msra.mxu1 %v2978_v42 }
  0x57   :  { %2239 = vmatpush3.msra.mxu0 %v2964_v40  ;;  %2248 = vmatprep.subr.mxu1 %v2753_v7 }
  0x58   :  { %2240 = vmatprep.subr.mxu0 %v2971_v41 }
  0x59   :  { %2241 = vmatpush3.msra.mxu0 %v2978_v42 }
  0x5a   :  { %2147 = vmatprep.subr.msk.mxu0 %vm411_vm1, %v3047_v63 }
  0xfa   :  { %v215_v50 = vpop.f32.mrf.mxu0 }
  0xfb   :  { %v2990_v51 = vadd.f32 %v215_v50, %v135_v48 }
  0xfc   :  { %v217_v52 = vpop.f32.mrf.mxu0 }
  0xfd   :  { %v2992_v53 = vadd.f32 %v217_v52, %v139_v49  ;;  %v303_v56 = vmul.f32 %v2990_v51, %v2990_v51 }
  0xfe   :  { %v221_v54 = vpop.f32.mrf.mxu0 }
  0xff   :  { %290 = vmatprep.mubr.f32.mxu1 %v2992_v53  ;;  %v304_v55 = vmul.f32 %v2992_v53, %v2992_v53  ;;  %v2999_v57 = vadd.f32 %v221_v54, %v135_v48 }
 0x100   :  { %v223_v58 = vpop.f32.mrf.mxu0  ;;  %291 = vmatmul.mubr.f32.vlgmr.msra.gmra.mxu1 %v2990_v51 }
 0x101   :  { %v3002_v59 = vadd.f32 %v223_v58, %v139_v49  ;;  %371 = vmatprep.mubr.f32.mxu0 %v304_v55  ;;  %2249 = vmatpush3.msra.mxu1 %v2758_v8  ;;  %v305_v61 = vmul.f32 %v2999_v57, %v2999_v57 }
 0x102   :  { %372 = vmatmul.mubr.f32.vlgmr.msra.gmra.mxu0 %v303_v56  ;;  %2250 = vmatprep.subr.mxu1 %v2764_v10 }
 0x103   :  { %295 = vmatprep.mubr.f32.mxu1 %v3002_v59  ;;  %v306_v60 = vmul.f32 %v3002_v59, %v3002_v59  ;;  %2251 = vmatpush3.msra.mxu1 %v2769_v11 }
 0x104   :  { %296 = vmatmul.mubr.f32.gmra.mxu1 %v2999_v57  ;;  %2252 = vmatprep.subr.mxu1 %v2775_v13 }
 0x105   :  { %376 = vmatprep.mubr.f32.mxu0 %v306_v60  ;;  %2253 = vmatpush3.msra.mxu1 %v2786_v15 }
 0x106   :  { %377 = vmatmul.mubr.f32.gmra.mxu0 %v305_v61  ;;  %2254 = vmatprep.subr.mxu1 %v2793_v16 }
 0x107   :  { %480 = vmatprep.mubr.f32.mxu0 %v3626_v0  ;;  %2255 = vmatpush3.msra.mxu1 %v2805_v18 }
 0x108   :  { %2256 = vmatprep.subr.mxu1 %v2812_v19  ;;  %2148 = vmatpush1.msk.msra.mxu0 %vm411_vm1, %v3043_v62 }
 0x109   :  { %2257 = vmatpush3.msra.mxu1 %v2819_v20  ;;  %640 = vmatprep.subr.mxu0 %v590_v1 }
 0x10a   :  { %2258 = vmatprep.subr.mxu1 %v2826_v21 }
 0x10b   :  { %2259 = vmatpush3.msra.mxu1 %v2833_v22 }
 0x10c   :  { %2260 = vmatprep.subr.mxu1 %v2840_v23 }
 0x10d   :  { %2261 = vmatpush3.msra.mxu1 %v2847_v24 }
 0x10e   :  { %2262 = vmatprep.subr.mxu1 %v2854_v25 }
 0x10f   :  { %2263 = vmatpush3.msra.mxu1 %v2861_v26 }
 0x110   :  { %2264 = vmatprep.subr.mxu1 %v2868_v27 }
 0x111   :  { %2265 = vmatpush3.msra.mxu1 %v2875_v28 }
 0x112   :  { %2266 = vmatprep.subr.mxu1 %v2882_v29 }
 0x113   :  { %2267 = vmatpush3.msra.mxu1 %v2889_v30 }
 0x114   :  { %2268 = vmatprep.subr.mxu1 %v2896_v31 }
 0x115   :  { %2269 = vmatpush3.msra.mxu1 %v2903_v32 }
 0x116   :  { %2270 = vmatprep.subr.mxu1 %v2910_v33 }
 0x117   :  { %2271 = vmatpush3.msra.mxu1 %v2917_v34 }
 0x118   :  { %2272 = vmatprep.subr.mxu1 %v2924_v35 }
 0x119   :  { %2273 = vmatpush3.msra.mxu1 %v2931_v36 }
 0x11a   :  { %2274 = vmatprep.subr.mxu1 %v2944_v37 }
 0x11b   :  { %2275 = vmatpush3.msra.mxu1 %v2950_v38 }
 0x11c   :  { %2276 = vmatprep.subr.mxu1 %v2957_v39 }
 0x11d   :  { %2277 = vmatpush3.msra.mxu1 %v2964_v40 }
 0x11e   :  { %2278 = vmatprep.subr.mxu1 %v2971_v41 }
 0x11f   :  { %2279 = vmatpush3.msra.mxu1 %v2978_v42 }
 0x120   :  { %2286 = vmatprep.subr.mxu1 %v2753_v7 }
 0x1c0   :  { %v2204_v2 = vpop.f32.mrf.mxu1 }
 0x1c2   :  { %v2205_v3 = vpop.f32.mrf.mxu1  ;;  %v2242_v4 = vpop.f32.mrf.mxu0 }
 0x1c3   :  { %v2206_v5 = vadd.f32 %v2205_v3, %v2204_v2  ;;  %v589_v3 = vld [vmem:[#allocation5 + $0xf0] sm:$0xff] }
 0x1c4   :  { %v2207_v6 = vpop.f32.mrf.mxu1  ;;  %v2243_v9 = vpop.f32.mrf.mxu0 }
 0x1c5   :  { %v301_v12 = vmul.f32 0.015625, %v2206_v5  ;;  %v2244_v14 = vadd.f32 %v2243_v9, %v2242_v4  ;;  %v588_v5 = vld [vmem:[#allocation5 + $0xe8] sm:$0xff]  ;;  %v586_v9 = vld [vmem:[#allocation5 + $0xd8] sm:$0xff] }
 0x1c6   :  { %v2208_v17 = vpop.f32.mrf.mxu1  ;;  %v2245_v43 = vpop.f32.mrf.mxu0 }
 0x1c7   :  { %v384_v44 = vmul.f32 %v301_v12, %v301_v12  ;;  %v382_v46 = vmul.f32 0.015625, %v2244_v14  ;;  %v2209_v48 = vadd.f32 %v2208_v17, %v2207_v6  ;;  %v587_v6 = vld [vmem:[#allocation5 + $0xe0] sm:$0xff]  ;;  %v585_v14 = vld [vmem:[#allocation5 + $0xd0] sm:$0xff] }
 0x1c8   :  { %v2246_v49 = vpop.f32.mrf.mxu0 }
 0x1c9   :  { %v386_v50 = vsub.f32 %v382_v46, %v384_v44  ;;  %v302_v52 = vmul.f32 0.015625, %v2209_v48  ;;  %v2247_v54 = vadd.f32 %v2246_v49, %v2245_v43  ;;  %v584_v43 = vld [vmem:[#allocation5 + $0xc8] sm:$0xff]  ;;  %v583_v44 = vld [vmem:[#allocation5 + $0xc0] sm:$0xff]  ;;  %v582_v46 = vld [vmem:[#allocation5 + $0xb8] sm:$0xff] }
 0x1ca   :  { %v581_v49 = vld [vmem:[#allocation5 + $0xb0] sm:$0xff] }
 0x1cb   :  { %v388_v55 = vmax.f32 %v386_v50, 0.0  ;;  %v385_v56 = vmul.f32 %v302_v52, %v302_v52  ;;  %v383_v58 = vmul.f32 0.015625, %v2247_v54  ;;  %v580_v50 = vld [vmem:[#allocation5 + $0xa8] sm:$0xff]  ;;  %v579_v54 = vld [vmem:[#allocation5 + $0xa0] sm:$0xff] }
 0x1cd   :  { %v390_v60 = vadd.f32 1e-05, %v388_v55  ;;  %v387_v61 = vsub.f32 %v383_v58, %v385_v56  ;;  %v578_v55 = vld [vmem:[#allocation5 + $0x98] sm:$0xff]  ;;  %v577_v58 = vld [vmem:[#allocation5 + $0x90] sm:$0xff] }
 0x1cf   :  { %2525 = vrsqrt.f32 %v390_v60  ;;  %v389_v1 = vmax.f32 %v387_v61, 0.0  ;;  %v576_v60 = vld [vmem:[#allocation5 + $0x88] sm:$0xff]  ;;  %v574_v61 = vld [vmem:[#allocation5 + $0x78] sm:$0xff] }
 0x1d1   :  { %v391_v2 = vadd.f32 1e-05, %v389_v1  ;;  %v573_v1 = vld [vmem:[#allocation5 + $0x70] sm:$0xff] }
 0x1d3   :  { %2527 = vrsqrt.f32 %v391_v2  ;;  %v572_v2 = vld [vmem:[#allocation5 + $0x68] sm:$0xff] }
 0x1dc   :  { %v2526_v4 = vpop.eup %2525 }
 0x1dd   :  { %2149 = vmatmul.mubr.msk.f32.vlgmr.msra.gmra.mxu0 %vm398_vm2, %v2526_v4  ;;  %v394_v48 = vmul.f32 %v2526_v4, %v301_v12  ;;  %v575_v12 = vld [vmem:[#allocation5 + $0x80] sm:$0xff]  ;;  %v570_v4 = vld [vmem:[#allocation5 + $0x58] sm:$0xff] }
 0x1de   :  { %486 = vmatprep.mubr.f32.mxu0 %v3626_v0  ;;  %641 = vmatpush1.msra.mxu0 %v589_v3  ;;  %v571_v3 = vld [vmem:[#allocation5 + $0x60] sm:$0xff] }
 0x1df   :  { %642 = vmatprep.subr.mxu0 %v588_v5  ;;  %v568_v5 = vld [vmem:[#allocation5 + $0x48] sm:$0xff] }
 0x1e0   :  { %v2528_v17 = vpop.eup %2527  ;;  %643 = vmatpush1.msra.mxu0 %v587_v6  ;;  %v567_v6 = vld [vmem:[#allocation5 + $0x40] sm:$0xff] }
 0x1e1   :  { %2150 = vmatmul.mubr.msk.f32.gmra.mxu0 %vm398_vm2, %v2528_v17  ;;  %644 = vmatprep.subr.mxu0 %v586_v9  ;;  %v395_v56 = vmul.f32 %v2528_v17, %v302_v52  ;;  %v569_v52 = vld [vmem:[#allocation5 + $0x50] sm:$0xff]  ;;  %v566_v9 = vld [vmem:[#allocation5 + $0x38] sm:$0xff]  ;;  %v564_v17 = vld [vmem:[#allocation5 + $0x28] sm:$0xff] }
 0x1e2   :  { %492 = vmatprep.mubr.f32.mxu0 %v3626_v0  ;;  %645 = vmatpush1.msra.mxu0 %v585_v14  ;;  %v565_v14 = vld [vmem:[#allocation5 + $0x30] sm:$0xff] }
 0x1e3   :  { %646 = vmatprep.subr.mxu0 %v584_v43  ;;  %v563_v43 = vld [vmem:[#allocation5 + $0x20] sm:$0xff] }
 0x1e4   :  { %647 = vmatpush1.msra.mxu0 %v583_v44  ;;  %v562_v44 = vld [vmem:[#allocation5 + $0x18] sm:$0xff] }
 0x1e5   :  { %2151 = vmatmul.mubr.msk.f32.gmra.mxu0 %vm398_vm2, %v394_v48  ;;  %648 = vmatprep.subr.mxu0 %v582_v46  ;;  %v561_v46 = vld [vmem:[#allocation5 + $0x10] sm:$0xff]  ;;  %v560_v48 = vld [vmem:[#allocation5 + $0x8] sm:$0xff] }
 0x1e6   :  { %498 = vmatprep.mubr.f32.mxu0 %v3626_v0  ;;  %649 = vmatpush1.msra.mxu0 %v581_v49  ;;  %v559_v49 = vld [vmem:[#allocation5] sm:$0xff] }
 0x1e7   :  { %650 = vmatprep.subr.mxu0 %v580_v50  ;;  %v622_v50 = vld [vmem:[#allocation5 + $0x1f8] sm:$0xff] }
 0x1e8   :  { %651 = vmatpush1.msra.mxu0 %v579_v54  ;;  %v621_v54 = vld [vmem:[#allocation5 + $0x1f0] sm:$0xff] }
 0x1e9   :  { %2152 = vmatmul.mubr.msk.f32.gmra.mxu0 %vm398_vm2, %v395_v56  ;;  %652 = vmatprep.subr.mxu0 %v578_v55  ;;  %v620_v55 = vld [vmem:[#allocation5 + $0x1e8] sm:$0xff]  ;;  %v619_v56 = vld [vmem:[#allocation5 + $0x1e0] sm:$0xff] }
 0x1ea   :  { %653 = vmatpush1.msra.mxu0 %v577_v58  ;;  %v618_v58 = vld [vmem:[#allocation5 + $0x1d8] sm:$0xff] }
 0x1eb   :  { %654 = vmatprep.subr.mxu0 %v576_v60  ;;  %v617_v60 = vld [vmem:[#allocation5 + $0x1d0] sm:$0xff] }
 0x1ec   :  { %655 = vmatpush1.msra.mxu0 %v575_v12  ;;  %v616_v12 = vld [vmem:[#allocation5 + $0x1c8] sm:$0xff] }
 0x1ed   :  { %656 = vmatprep.subr.mxu0 %v574_v61  ;;  %v615_v61 = vld [vmem:[#allocation5 + $0x1c0] sm:$0xff] }
 0x1ee   :  { %657 = vmatpush1.msra.mxu0 %v573_v1  ;;  %v614_v1 = vld [vmem:[#allocation5 + $0x1b8] sm:$0xff] }
 0x1ef   :  { %658 = vmatprep.subr.mxu0 %v572_v2  ;;  %v613_v2 = vld [vmem:[#allocation5 + $0x1b0] sm:$0xff] }
 0x1f0   :  { %659 = vmatpush1.msra.mxu0 %v571_v3  ;;  %v612_v3 = vld [vmem:[#allocation5 + $0x1a8] sm:$0xff] }
 0x1f1   :  { %660 = vmatprep.subr.mxu0 %v570_v4  ;;  %v611_v4 = vld [vmem:[#allocation5 + $0x1a0] sm:$0xff] }
 0x1f2   :  { %661 = vmatpush1.msra.mxu0 %v569_v52  ;;  %v610_v52 = vld [vmem:[#allocation5 + $0x198] sm:$0xff] }
 0x1f3   :  { %662 = vmatprep.subr.mxu0 %v568_v5  ;;  %v609_v5 = vld [vmem:[#allocation5 + $0x190] sm:$0xff] }
 0x1f4   :  { %663 = vmatpush1.msra.mxu0 %v567_v6  ;;  %v608_v6 = vld [vmem:[#allocation5 + $0x188] sm:$0xff] }
 0x1f5   :  { %664 = vmatprep.subr.mxu0 %v566_v9  ;;  %v607_v9 = vld [vmem:[#allocation5 + $0x180] sm:$0xff] }
 0x1f6   :  { %665 = vmatpush1.msra.mxu0 %v565_v14  ;;  %v606_v14 = vld [vmem:[#allocation5 + $0x178] sm:$0xff] }
 0x1f7   :  { %666 = vmatprep.subr.mxu0 %v564_v17  ;;  %v605_v17 = vld [vmem:[#allocation5 + $0x170] sm:$0xff] }
 0x1f8   :  { %667 = vmatpush1.msra.mxu0 %v563_v43  ;;  %v604_v43 = vld [vmem:[#allocation5 + $0x168] sm:$0xff] }
 0x1f9   :  { %668 = vmatprep.subr.mxu0 %v562_v44  ;;  %v603_v44 = vld [vmem:[#allocation5 + $0x160] sm:$0xff] }
 0x1fa   :  { %669 = vmatpush1.msra.mxu0 %v561_v46  ;;  %v602_v46 = vld [vmem:[#allocation5 + $0x158] sm:$0xff] }
 0x1fb   :  { %670 = vmatprep.subr.mxu0 %v560_v48  ;;  %v601_v48 = vld [vmem:[#allocation5 + $0x150] sm:$0xff] }
 0x1fc   :  { %671 = vmatpush1.msra.mxu0 %v559_v49  ;;  %v600_v49 = vld [vmem:[#allocation5 + $0x148] sm:$0xff] }
 0x1fd   :  { %672 = vmatprep.subr.mxu0 %v622_v50  ;;  %v599_v50 = vld [vmem:[#allocation5 + $0x140] sm:$0xff] }
 0x1fe   :  { %673 = vmatpush2.msra.mxu0 %v621_v54  ;;  %v598_v54 = vld [vmem:[#allocation5 + $0x138] sm:$0xff] }
 0x1ff   :  { %674 = vmatprep.subr.mxu0 %v620_v55  ;;  %v597_v55 = vld [vmem:[#allocation5 + $0x130] sm:$0xff] }
 0x200   :  { %675 = vmatpush2.msra.mxu0 %v619_v56  ;;  %v596_v56 = vld [vmem:[#allocation5 + $0x128] sm:$0xff] }
 0x201   :  { %676 = vmatprep.subr.mxu0 %v618_v58  ;;  %v595_v58 = vld [vmem:[#allocation5 + $0x120] sm:$0xff] }
 0x202   :  { %677 = vmatpush2.msra.mxu0 %v617_v60  ;;  %v594_v60 = vld [vmem:[#allocation5 + $0x118] sm:$0xff] }
 0x203   :  { %678 = vmatprep.subr.mxu0 %v616_v12  ;;  %v593_v12 = vld [vmem:[#allocation5 + $0x110] sm:$0xff] }
 0x204   :  { %679 = vmatpush2.msra.mxu0 %v615_v61  ;;  %v592_v61 = vld [vmem:[#allocation5 + $0x108] sm:$0xff] }
 0x205   :  { %680 = vmatprep.subr.mxu0 %v614_v1  ;;  %v591_v1 = vld [vmem:[#allocation5 + $0x100] sm:$0xff] }
 0x206   :  { %681 = vmatpush2.msra.mxu0 %v613_v2  ;;  %v128_v2 = vld [vmem:[#allocation7 + $0x4] ss:$8 sm:$0x3] }
 0x207   :  { %682 = vmatprep.subr.mxu0 %v612_v3 }
 0x208   :  { %683 = vmatpush2.msra.mxu0 %v611_v4 }
 0x209   :  { %684 = vmatprep.subr.mxu0 %v610_v52  ;;  %v509_v52 = vrot.slane %v128_v2, %v2984_v45 }
 0x20a   :  { %685 = vmatpush2.msra.mxu0 %v609_v5 }
 0x20b   :  { %686 = vmatprep.subr.mxu0 %v608_v6  ;;  %v130_v6 = vld [vmem:[#allocation7 + $0x10] ss:$8 sm:$0x3] }
 0x20c   :  { %687 = vmatpush2.msra.mxu0 %v607_v9  ;;  %v513_v9 = vrot.slane %v128_v2, %v2986_v47 }
 0x20d   :  { %688 = vmatprep.subr.mxu0 %v606_v14 }
 0x20e   :  { %689 = vmatpush2.msra.mxu0 %v605_v17 }
 0x20f   :  { %690 = vmatprep.subr.mxu0 %v604_v43  ;;  %v528_v43 = vrot.slane %v130_v6, %v2984_v45 }
 0x210   :  { %691 = vmatpush2.msra.mxu0 %v603_v44 }
 0x211   :  { %692 = vmatprep.subr.mxu0 %v602_v46 }
 0x212   :  { %693 = vmatpush2.msra.mxu0 %v601_v48 }
 0x213   :  { %694 = vmatprep.subr.mxu0 %v600_v49  ;;  %v532_v49 = vrot.slane %v130_v6, %v2986_v47 }
 0x214   :  { %695 = vmatpush2.msra.mxu0 %v599_v50 }
 0x215   :  { %696 = vmatprep.subr.mxu0 %v598_v54 }
 0x216   :  { %697 = vmatpush2.msra.mxu0 %v597_v55 }
 0x217   :  { %698 = vmatprep.subr.mxu0 %v596_v56 }
 0x218   :  { %699 = vmatpush2.msra.mxu0 %v595_v58 }
 0x219   :  { %700 = vmatprep.subr.mxu0 %v594_v60 }
 0x21a   :  { %701 = vmatpush2.msra.mxu0 %v593_v12 }
 0x21b   :  { %702 = vmatprep.subr.mxu0 %v592_v61 }
 0x21c   :  { %703 = vmatpush2.msra.mxu0 %v591_v1 }
 0x21d   :  { %2153 = vmatprep.subr.msk.mxu0 %vm411_vm1, %v3047_v63 }
 0x29d   :  { %v482_v3 = vpop.f32.mrf.mxu0 }
 0x29e   :  { %v516_v17 = vmul.f32 %v509_v52, %v482_v3 }
 0x29f   :  { %v484_v4 = vpop.f32.mrf.mxu0 }
 0x2a0   :  { %v517_v46 = vmul.f32 %v513_v9, %v484_v4  ;;  %v539_v54 = vmul.f32 %v516_v17, %v2990_v51 }
 0x2a1   :  { %v488_v5 = vpop.f32.mrf.mxu0 }
 0x2a2   :  { %v518_v55 = vmul.f32 %v509_v52, %v488_v5  ;;  %v540_v61 = vmul.f32 %v517_v46, %v2992_v53 }
 0x2a3   :  { %v490_v14 = vpop.f32.mrf.mxu0 }
 0x2a4   :  { %v519_v60 = vmul.f32 %v513_v9, %v490_v14  ;;  %v541_v63 = vmul.f32 %v518_v55, %v2999_v57 }
 0x2a5   :  { %v494_v44 = vpop.f32.mrf.mxu0 }
 0x2a6   :  { %v520_v48 = vmul.f32 %v509_v52, %v494_v44  ;;  %v542_v6 = vmul.f32 %v519_v60, %v3002_v59  ;;  %v624_v59 = vld [vmem:[#allocation7 + $0x1] ss:$8 sm:$0x3]  ;;  %v1053_v60 = vld [vmem:[#allocation5 + $0x250] sm:$0xff] }
 0x2a7   :  { %v496_v50 = vpop.f32.mrf.mxu0 }
 0x2a8   :  { %v535_v56 = vsub.f32 %v528_v43, %v520_v48  ;;  %v521_v58 = vmul.f32 %v513_v9, %v496_v50 }
 0x2a9   :  { %v500_v12 = vpop.f32.mrf.mxu0 }
 0x2aa   :  { %v543_v1 = vadd.f32 %v539_v54, %v535_v56  ;;  %v536_v2 = vsub.f32 %v532_v49, %v521_v58  ;;  %v522_v3 = vmul.f32 %v509_v52, %v500_v12  ;;  %v1054_v58 = vld [vmem:[#allocation5 + $0x258] sm:$0xff]  ;;  %v1052_v12 = vld [vmem:[#allocation5 + $0x248] sm:$0xff] }
 0x2ab   :  { %v502_v0 = vpop.f32.mrf.mxu0 }
 0x2ac   :  { %v544_v4 = vadd.f32 %v540_v61, %v536_v2  ;;  %v537_v44 = vsub.f32 %v528_v43, %v522_v3  ;;  %v523_v42 = vmul.f32 %v513_v9, %v502_v0  ;;  %v551_v41 = vmul.f32 0.2, %v543_v1  ;;  %v1051_v61 = vld [vmem:[#allocation5 + $0x240] sm:$0xff]  ;;  %v1049_v2 = vld [vmem:[#allocation5 + $0x230] sm:$0xff]  ;;  %v1048_v3 = vld [vmem:[#allocation5 + $0x228] sm:$0xff] }
 0x2ad   :  { %vm547_vm3 = vcmp.ge.f32.partialorder %v543_v1, 0.0 }
 0x2ae   :  { %v545_v51 = vadd.f32 %v541_v63, %v537_v44  ;;  %v538_v5 = vsub.f32 %v532_v49, %v523_v42  ;;  %vm548_vm4 = vcmp.ge.f32.partialorder %v544_v4, 0.0  ;;  %v552_v14 = vmul.f32 0.2, %v544_v4  ;;  %v1046_v44 = vld [vmem:[#allocation5 + $0x218] sm:$0xff] }
 0x2af   :  { %v555_v53 = vsel %vm547_vm3, %v543_v1, %v551_v41  ;;  %v3639_v42 = vmov 0.0   ;;  %v637_v63 = vrot.slane %v624_v59, %v2986_v47  ;;  %v633_v41 = vrot.slane %v624_v59, %v2984_v45  ;;  %v1050_v1 = vld [vmem:[#allocation5 + $0x238] sm:$0xff] }
 0x2b0   :  { %v546_v17 = vadd.f32 %v542_v6, %v538_v5  ;;  %v556_v48 = vsel %vm548_vm4, %v544_v4, %v552_v14  ;;  %v553_v46 = vmul.f32 0.2, %v545_v51  ;;  %vm549_vm6 = vcmp.ge.f32.partialorder %v545_v51, 0.0  ;;  %v1047_v4 = vld [vmem:[#allocation5 + $0x220] sm:$0xff]  ;;  %v1045_v6 = vld [vmem:[#allocation5 + $0x210] sm:$0xff]  ;;  %v1106_v14 = vld [vmem:[#allocation5 + $0x3f8] sm:$0xff] }
 0x2b1   :  { %704 = vmatprep.mubr.f32.mxu0 %v556_v48  ;;  %v1043_v5 = vld [vmem:[#allocation5 + $0x200] sm:$0xff]  ;;  %v1104_v48 = vld [vmem:[#allocation5 + $0x3e8] sm:$0xff]  ;;  %v1098_v59 = vld [vmem:[#allocation5 + $0x3b8] sm:$0xff] }
 0x2b2   :  { %705 = vmatmul.mubr.f32.vlgmr.msra.gmra.mxu0 %v555_v53  ;;  %vm550_vm5 = vcmp.ge.f32.partialorder %v546_v17, 0.0  ;;  %v554_v52 = vmul.f32 0.2, %v546_v17  ;;  %v557_v57 = vsel %vm549_vm6, %v545_v51, %v553_v46  ;;  %v1044_v51 = vld [vmem:[#allocation5 + $0x208] sm:$0xff]  ;;  %v1103_v53 = vld [vmem:[#allocation5 + $0x3e0] sm:$0xff]  ;;  %v1102_v46 = vld [vmem:[#allocation5 + $0x3d8] sm:$0xff] }
 0x2b3   :  { %2154 = vmatpush1.msk.msra.mxu0 %vm411_vm1, %v3043_v62 }
 0x2b4   :  { %v558_v0 = vsel %vm550_vm5, %v546_v17, %v554_v52  ;;  %2324 = vmatprep.subr.mxu0 %v2753_v7  ;;  %v1105_v17 = vld [vmem:[#allocation5 + $0x3f0] sm:$0xff] }
 0x2b5   :  { %710 = vmatprep.mubr.f32.mxu0 %v558_v0  ;;  %v1101_v52 = vld [vmem:[#allocation5 + $0x3d0] sm:$0xff]  ;;  %v1100_v0 = vld [vmem:[#allocation5 + $0x3c8] sm:$0xff] }
 0x2b6   :  { %711 = vmatmul.mubr.f32.gmra.mxu0 %v557_v57  ;;  %v1099_v57 = vld [vmem:[#allocation5 + $0x3c0] sm:$0xff] }
 0x2b7   :  { %963 = vmatprep.mubr.f32.mxu0 %v3639_v42 }
 0x372   :  { %v706_v9 = vpop.f32.mrf.mxu0 }
 0x373   :  { %v3078_v50 = vadd.f32 %v706_v9, %v633_v41 }
 0x374   :  { %v708_v43 = vpop.f32.mrf.mxu0 }
 0x375   :  { %v3076_v49 = vadd.f32 %v708_v43, %v637_v63 }
 0x376   :  { %v712_v62 = vpop.f32.mrf.mxu0 }
 0x377   :  { %781 = vmatprep.mubr.f32.mxu1 %v3076_v49  ;;  %v3085_v55 = vadd.f32 %v712_v62, %v633_v41  ;;  %v795_v56 = vmul.f32 %v3076_v49, %v3076_v49  ;;  %v1096_v41 = vld [vmem:[#allocation5 + $0x3a8] sm:$0xff] }
 0x378   :  { %v714_v7 = vpop.f32.mrf.mxu0  ;;  %782 = vmatmul.mubr.f32.vlgmr.msra.gmra.mxu1 %v3078_v50 }
 0x379   :  { %v3082_v54 = vadd.f32 %v714_v7, %v637_v63  ;;  %2287 = vmatpush3.msra.mxu1 %v2758_v8  ;;  %v794_v8 = vmul.f32 %v3078_v50, %v3078_v50  ;;  %v1097_v63 = vld [vmem:[#allocation5 + $0x3b0] sm:$0xff] }
 0x37a   :  { %2288 = vmatprep.subr.mxu1 %v2764_v10  ;;  %v3640_v10 = vld [vmem:[#allocation15_spill] sm:$0xff] }
 0x37b   :  { %2289 = vmatpush3.msra.mxu1 %v2769_v11  ;;  %786 = vmatprep.mubr.f32.mxu1 %v3082_v54  ;;  %v3641_v11 = vld [vmem:[#allocation16_spill] sm:$0xff] }
 0x37c   :  { %2290 = vmatprep.subr.mxu1 %v2775_v13  ;;  %787 = vmatmul.mubr.f32.gmra.mxu1 %v3085_v55  ;;  %v797_v13 = vmul.f32 %v3082_v54, %v3082_v54 }
 0x37d   :  { %2291 = vmatpush3.msra.mxu1 %v2786_v15  ;;  %862 = vmatprep.mubr.f32.mxu1 %v795_v56  ;;  %v796_v15 = vmul.f32 %v3085_v55, %v3085_v55 }
 0x37e   :  { %2292 = vmatprep.subr.mxu1 %v2793_v16  ;;  %v1074_v16 = vld [vmem:[#allocation5 + $0x2f8] sm:$0xff] }
 0x37f   :  { %2293 = vmatpush3.msra.mxu1 %v2805_v18  ;;  %v1073_v18 = vld [vmem:[#allocation5 + $0x2f0] sm:$0xff] }
 0x380   :  { %2294 = vmatprep.subr.mxu1 %v2812_v19  ;;  %v1072_v19 = vld [vmem:[#allocation5 + $0x2e8] sm:$0xff] }
 0x381   :  { %2295 = vmatpush3.msra.mxu1 %v2819_v20  ;;  %v1071_v20 = vld [vmem:[#allocation5 + $0x2e0] sm:$0xff] }
 0x382   :  { %2296 = vmatprep.subr.mxu1 %v2826_v21  ;;  %v1070_v21 = vld [vmem:[#allocation5 + $0x2d8] sm:$0xff] }
 0x383   :  { %2297 = vmatpush3.msra.mxu1 %v2833_v22  ;;  %v1069_v22 = vld [vmem:[#allocation5 + $0x2d0] sm:$0xff] }
 0x384   :  { %2298 = vmatprep.subr.mxu1 %v2840_v23  ;;  %v1068_v23 = vld [vmem:[#allocation5 + $0x2c8] sm:$0xff] }
 0x385   :  { %2299 = vmatpush3.msra.mxu1 %v2847_v24  ;;  %v1067_v24 = vld [vmem:[#allocation5 + $0x2c0] sm:$0xff] }
 0x386   :  { %2300 = vmatprep.subr.mxu1 %v2854_v25  ;;  %v1066_v25 = vld [vmem:[#allocation5 + $0x2b8] sm:$0xff] }
 0x387   :  { %2301 = vmatpush3.msra.mxu1 %v2861_v26  ;;  %v1065_v26 = vld [vmem:[#allocation5 + $0x2b0] sm:$0xff] }
 0x388   :  { %2302 = vmatprep.subr.mxu1 %v2868_v27  ;;  %v1064_v27 = vld [vmem:[#allocation5 + $0x2a8] sm:$0xff] }
 0x389   :  { %2303 = vmatpush3.msra.mxu1 %v2875_v28  ;;  %v1063_v28 = vld [vmem:[#allocation5 + $0x2a0] sm:$0xff] }
 0x38a   :  { %2304 = vmatprep.subr.mxu1 %v2882_v29  ;;  %v1062_v29 = vld [vmem:[#allocation5 + $0x298] sm:$0xff] }
 0x38b   :  { %2305 = vmatpush3.msra.mxu1 %v2889_v30  ;;  %v1061_v30 = vld [vmem:[#allocation5 + $0x290] sm:$0xff] }
 0x38c   :  { %2306 = vmatprep.subr.mxu1 %v2896_v31  ;;  %v1060_v31 = vld [vmem:[#allocation5 + $0x288] sm:$0xff] }
 0x38d   :  { %2307 = vmatpush3.msra.mxu1 %v2903_v32  ;;  %v1059_v32 = vld [vmem:[#allocation5 + $0x280] sm:$0xff] }
 0x38e   :  { %2308 = vmatprep.subr.mxu1 %v2910_v33  ;;  %v1058_v33 = vld [vmem:[#allocation5 + $0x278] sm:$0xff] }
 0x38f   :  { %2309 = vmatpush3.msra.mxu1 %v2917_v34  ;;  %v1057_v34 = vld [vmem:[#allocation5 + $0x270] sm:$0xff] }
 0x390   :  { %2310 = vmatprep.subr.mxu1 %v2924_v35  ;;  %v1056_v35 = vld [vmem:[#allocation5 + $0x268] sm:$0xff] }
 0x391   :  { %2311 = vmatpush3.msra.mxu1 %v2931_v36  ;;  %v1055_v36 = vld [vmem:[#allocation5 + $0x260] sm:$0xff] }
 0x392   :  { %2312 = vmatprep.subr.mxu1 %v2944_v37 }
 0x393   :  { %2313 = vmatpush3.msra.mxu1 %v2950_v38 }
 0x394   :  { %2314 = vmatprep.subr.mxu1 %v2957_v39 }
 0x395   :  { %2315 = vmatpush3.msra.mxu1 %v2964_v40 }
 0x396   :  { %2316 = vmatprep.subr.mxu1 %v3640_v10 }
 0x397   :  { %2317 = vmatpush3.msra.mxu1 %v3641_v11 }
 0x398   :  { %863 = vmatmul.mubr.f32.vlgmr.msra.gmra.mxu1 %v794_v8  ;;  %1124 = vmatprep.subr.mxu1 %v1074_v16 }
 0x399   :  { %867 = vmatprep.mubr.f32.mxu1 %v797_v13  ;;  %1125 = vmatpush1.msra.mxu1 %v1073_v18 }
 0x39a   :  { %1126 = vmatprep.subr.mxu1 %v1072_v19 }
 0x39b   :  { %1127 = vmatpush1.msra.mxu1 %v1071_v20 }
 0x39c   :  { %868 = vmatmul.mubr.f32.gmra.mxu1 %v796_v15  ;;  %1128 = vmatprep.subr.mxu1 %v1070_v21 }
 0x39d   :  { %1129 = vmatpush1.msra.mxu1 %v1069_v22 }
 0x39e   :  { %1130 = vmatprep.subr.mxu1 %v1068_v23 }
 0x39f   :  { %1131 = vmatpush1.msra.mxu1 %v1067_v24 }
 0x3a0   :  { %1132 = vmatprep.subr.mxu1 %v1066_v25 }
 0x3a1   :  { %1133 = vmatpush1.msra.mxu1 %v1065_v26 }
 0x3a2   :  { %1134 = vmatprep.subr.mxu1 %v1064_v27 }
 0x3a3   :  { %1135 = vmatpush1.msra.mxu1 %v1063_v28 }
 0x3a4   :  { %1136 = vmatprep.subr.mxu1 %v1062_v29 }
 0x3a5   :  { %1137 = vmatpush1.msra.mxu1 %v1061_v30 }
 0x3a6   :  { %1138 = vmatprep.subr.mxu1 %v1060_v31 }
 0x3a7   :  { %1139 = vmatpush1.msra.mxu1 %v1059_v32 }
 0x3a8   :  { %1140 = vmatprep.subr.mxu1 %v1058_v33 }
 0x3a9   :  { %1141 = vmatpush1.msra.mxu1 %v1057_v34  ;;  %v3132_v34 = vld [vmem:[%s3623_s6 + $0x78] sm:$0xff] }
 0x3aa   :  { %1142 = vmatprep.subr.mxu1 %v1056_v35  ;;  %v3138_v35 = vld [vmem:[%s3623_s6 + $0xf0] sm:$0xff] }
 0x3ab   :  { %1143 = vmatpush1.msra.mxu1 %v1055_v36 }
 0x3ac   :  { %1144 = vmatprep.subr.mxu1 %v1054_v58  ;;  %v3144_v58 = vld [vmem:[%s3623_s6 + $0x70] sm:$0xff] }
 0x3ad   :  { %1145 = vmatpush1.msra.mxu1 %v1053_v60  ;;  %v3151_v60 = vld [vmem:[%s3623_s6 + $0xe8] sm:$0xff] }
 0x3ae   :  { %1146 = vmatprep.subr.mxu1 %v1052_v12  ;;  %v3158_v12 = vld [vmem:[%s3623_s6 + $0x68] sm:$0xff] }
 0x3af   :  { %1147 = vmatpush1.msra.mxu1 %v1051_v61 }
 0x3b0   :  { %1148 = vmatprep.subr.mxu1 %v1050_v1  ;;  %v3164_v1 = vld [vmem:[%s3623_s6 + $0xe0] sm:$0xff] }
 0x3b1   :  { %1149 = vmatpush1.msra.mxu1 %v1049_v2  ;;  %v3170_v2 = vld [vmem:[%s3623_s6 + $0x60] sm:$0xff] }
 0x3b2   :  { %1150 = vmatprep.subr.mxu1 %v1048_v3  ;;  %v3177_v3 = vld [vmem:[%s3623_s6 + $0xd8] sm:$0xff] }
 0x3b3   :  { %1151 = vmatpush1.msra.mxu1 %v1047_v4  ;;  %v3184_v4 = vld [vmem:[%s3623_s6 + $0x58] sm:$0xff] }
 0x3b4   :  { %1152 = vmatprep.subr.mxu1 %v1046_v44 }
 0x3b5   :  { %1153 = vmatpush1.msra.mxu1 %v1045_v6  ;;  %v3190_v6 = vld [vmem:[%s3623_s6 + $0xd0] sm:$0xff] }
 0x3b6   :  { %1154 = vmatprep.subr.mxu1 %v1044_v51  ;;  %v3196_v51 = vld [vmem:[%s3623_s6 + $0x50] sm:$0xff] }
 0x3b7   :  { %1155 = vmatpush1.msra.mxu1 %v1043_v5  ;;  %v3203_v5 = vld [vmem:[%s3623_s6 + $0xc8] sm:$0xff] }
 0x3b8   :  { %1156 = vmatprep.subr.mxu1 %v1106_v14  ;;  %v3209_v14 = vld [vmem:[%s3623_s6 + $0x48] sm:$0xff] }
 0x3b9   :  { %1157 = vmatpush2.msra.mxu1 %v1105_v17  ;;  %v3215_v17 = vld [vmem:[%s3623_s6 + $0xc0] sm:$0xff] }
 0x3ba   :  { %1158 = vmatprep.subr.mxu1 %v1104_v48  ;;  %v3221_v48 = vld [vmem:[%s3623_s6 + $0x40] sm:$0xff] }
 0x3bb   :  { %1159 = vmatpush2.msra.mxu1 %v1103_v53  ;;  %v3227_v53 = vld [vmem:[%s3623_s6 + $0xb8] sm:$0xff] }
 0x3bc   :  { %1160 = vmatprep.subr.mxu1 %v1102_v46  ;;  %v3233_v46 = vld [vmem:[%s3623_s6 + $0x38] sm:$0xff] }
 0x3bd   :  { %1161 = vmatpush2.msra.mxu1 %v1101_v52  ;;  %v3239_v52 = vld [vmem:[%s3623_s6 + $0xb0] sm:$0xff] }
 0x3be   :  { %1162 = vmatprep.subr.mxu1 %v1100_v0  ;;  %v3245_v0 = vld [vmem:[%s3623_s6 + $0x30] sm:$0xff] }
 0x3bf   :  { %1163 = vmatpush2.msra.mxu1 %v1099_v57  ;;  %v3251_v57 = vld [vmem:[%s3623_s6 + $0xa8] sm:$0xff] }
 0x3c0   :  { %1164 = vmatprep.subr.mxu1 %v1098_v59  ;;  %v3257_v59 = vld [vmem:[%s3623_s6 + $0x28] sm:$0xff] }
 0x3c1   :  { %1165 = vmatpush2.msra.mxu1 %v1097_v63  ;;  %v3263_v63 = vld [vmem:[%s3623_s6 + $0xa0] sm:$0xff] }
 0x3c2   :  { %1166 = vmatprep.subr.mxu1 %v1096_v41  ;;  %v3269_v41 = vld [vmem:[%s3623_s6 + $0x20] sm:$0xff] }
 0x438   :  { %v2280_v9 = vpop.f32.mrf.mxu1 }
 0x43a   :  { %v2281_v43 = vpop.f32.mrf.mxu1 }
 0x43b   :  { %v2282_v7 = vadd.f32 %v2281_v43, %v2280_v9  ;;  %v3275_v9 = vld [vmem:[%s3623_s6 + $0x98] sm:$0xff] }
 0x43c   :  { %v2283_v62 = vpop.f32.mrf.mxu1  ;;  %v3281_v43 = vld [vmem:[%s3623_s6 + $0x18] sm:$0xff] }
 0x43d   :  { %v792_v13 = vmul.f32 0.015625, %v2282_v7  ;;  %v1095_v7 = vld [vmem:[#allocation5 + $0x3a0] sm:$0xff] }
 0x43e   :  { %v2284_v56 = vpop.f32.mrf.mxu1  ;;  %1167 = vmatpush2.msra.mxu1 %v1095_v7 }
 0x43f   :  { %v2285_v15 = vadd.f32 %v2284_v56, %v2283_v62  ;;  %v875_v20 = vmul.f32 %v792_v13, %v792_v13  ;;  %v3293_v62 = vld [vmem:[%s3623_s6 + $0xf8] sm:$0xff]  ;;  %v1088_v56 = vld [vmem:[#allocation5 + $0x368] sm:$0xff] }
 0x441   :  { %v793_v21 = vmul.f32 0.015625, %v2285_v15  ;;  %v1085_v15 = vld [vmem:[#allocation5 + $0x350] sm:$0xff] }
 0x443   :  { %v876_v26 = vmul.f32 %v793_v21, %v793_v21 }
 0x458   :  { %v2318_v8 = vpop.f32.mrf.mxu1 }
 0x45a   :  { %v2319_v16 = vpop.f32.mrf.mxu1 }
 0x45b   :  { %v2320_v18 = vadd.f32 %v2319_v16, %v2318_v8  ;;  %v1087_v8 = vld [vmem:[#allocation5 + $0x360] sm:$0xff]  ;;  %v1084_v16 = vld [vmem:[#allocation5 + $0x348] sm:$0xff] }
 0x45c   :  { %v2321_v19 = vpop.f32.mrf.mxu1 }
 0x45d   :  { %v873_v22 = vmul.f32 0.015625, %v2320_v18  ;;  %v1083_v18 = vld [vmem:[#allocation5 + $0x340] sm:$0xff] }
 0x45e   :  { %v2322_v23 = vpop.f32.mrf.mxu1 }
 0x45f   :  { %v877_v24 = vsub.f32 %v873_v22, %v875_v20  ;;  %v2323_v25 = vadd.f32 %v2322_v23, %v2321_v19  ;;  %v1082_v19 = vld [vmem:[#allocation5 + $0x338] sm:$0xff]  ;;  %v1081_v20 = vld [vmem:[#allocation5 + $0x330] sm:$0xff]  ;;  %v1079_v22 = vld [vmem:[#allocation5 + $0x320] sm:$0xff] }
 0x460   :  { %v1078_v23 = vld [vmem:[#allocation5 + $0x318] sm:$0xff] }
 0x461   :  { %v879_v27 = vmax.f32 %v877_v24, 0.0  ;;  %v874_v28 = vmul.f32 0.015625, %v2323_v25  ;;  %v1077_v24 = vld [vmem:[#allocation5 + $0x310] sm:$0xff]  ;;  %v1076_v25 = vld [vmem:[#allocation5 + $0x308] sm:$0xff] }
 0x463   :  { %v881_v29 = vadd.f32 1e-05, %v879_v27  ;;  %v878_v30 = vsub.f32 %v874_v28, %v876_v26  ;;  %v1075_v26 = vld [vmem:[#allocation5 + $0x300] sm:$0xff]  ;;  %v3642_v27 = vld [vmem:[#allocation17_spill] sm:$0xff] }
 0x464   :  { %v626_v28 = vld [vmem:[#allocation7 + $0x5] ss:$8 sm:$0x3] }
 0x465   :  { %2529 = vrsqrt.f32 %v881_v29  ;;  %v880_v31 = vmax.f32 %v878_v30, 0.0 }
 0x467   :  { %v882_v32 = vadd.f32 1e-05, %v880_v31  ;;  %v992_v31 = vrot.slane %v626_v28, %v2984_v45 }
 0x469   :  { %2531 = vrsqrt.f32 %v882_v32 }
 0x472   :  { %v2530_v33 = vpop.eup %2529 }
 0x473   :  { %2155 = vmatmul.mubr.msk.f32.vlgmr.msra.gmra.mxu0 %vm398_vm2, %v2530_v33  ;;  %v885_v61 = vmul.f32 %v2530_v33, %v792_v13  ;;  %v1086_v13 = vld [vmem:[#allocation5 + $0x358] sm:$0xff] }
 0x474   :  { %969 = vmatprep.mubr.f32.mxu0 %v3639_v42  ;;  %2325 = vmatpush3.msra.mxu0 %v3132_v34  ;;  %v628_v33 = vld [vmem:[#allocation7 + $0x11] ss:$8 sm:$0x3] }
 0x475   :  { %2326 = vmatprep.subr.mxu0 %v3138_v35  ;;  %v1011_v7 = vrot.slane %v628_v33, %v2984_v45 }
 0x476   :  { %v2532_v36 = vpop.eup %2531  ;;  %2327 = vmatpush3.msra.mxu0 %v3144_v58 }
 0x477   :  { %2156 = vmatmul.mubr.msk.f32.gmra.mxu0 %vm398_vm2, %v2532_v36  ;;  %2328 = vmatprep.subr.mxu0 %v3151_v60  ;;  %v886_v44 = vmul.f32 %v2532_v36, %v793_v21  ;;  %v1080_v21 = vld [vmem:[#allocation5 + $0x328] sm:$0xff]  ;;  %v996_v36 = vrot.slane %v626_v28, %v2986_v47 }
 0x478   :  { %975 = vmatprep.mubr.f32.mxu0 %v3639_v42  ;;  %2329 = vmatpush3.msra.mxu0 %v3158_v12 }
 0x479   :  { %2330 = vmatprep.subr.mxu0 %v3164_v1 }
 0x47a   :  { %2331 = vmatpush3.msra.mxu0 %v3170_v2 }
 0x47b   :  { %2157 = vmatmul.mubr.msk.f32.gmra.mxu0 %vm398_vm2, %v885_v61  ;;  %2332 = vmatprep.subr.mxu0 %v3177_v3 }
 0x47c   :  { %981 = vmatprep.mubr.f32.mxu0 %v3639_v42  ;;  %2333 = vmatpush3.msra.mxu0 %v3184_v4 }
 0x47d   :  { %2334 = vmatprep.subr.mxu0 %v3190_v6 }
 0x47e   :  { %2335 = vmatpush3.msra.mxu0 %v3196_v51 }
 0x47f   :  { %2158 = vmatmul.mubr.msk.f32.gmra.mxu0 %vm398_vm2, %v886_v44  ;;  %2336 = vmatprep.subr.mxu0 %v3203_v5 }
 0x480   :  { %2337 = vmatpush3.msra.mxu0 %v3209_v14 }
 0x481   :  { %2338 = vmatprep.subr.mxu0 %v3215_v17 }
 0x482   :  { %2339 = vmatpush3.msra.mxu0 %v3221_v48 }
 0x483   :  { %2340 = vmatprep.subr.mxu0 %v3227_v53 }
 0x484   :  { %2341 = vmatpush3.msra.mxu0 %v3233_v46 }
 0x485   :  { %2342 = vmatprep.subr.mxu0 %v3239_v52 }
 0x486   :  { %2343 = vmatpush3.msra.mxu0 %v3245_v0 }
 0x487   :  { %2344 = vmatprep.subr.mxu0 %v3251_v57 }
 0x488   :  { %2345 = vmatpush3.msra.mxu0 %v3257_v59 }
 0x489   :  { %2346 = vmatprep.subr.mxu0 %v3263_v63 }
 0x48a   :  { %2347 = vmatpush3.msra.mxu0 %v3269_v41 }
 0x48b   :  { %2348 = vmatprep.subr.mxu0 %v3275_v9 }
 0x48c   :  { %2349 = vmatpush3.msra.mxu0 %v3281_v43 }
 0x48d   :  { %2350 = vmatprep.subr.mxu0 %v2944_v37  ;;  %v1094_v37 = vld [vmem:[#allocation5 + $0x398] sm:$0xff] }
 0x48e   :  { %2351 = vmatpush3.msra.mxu0 %v2950_v38  ;;  %1168 = vmatprep.subr.mxu1 %v1094_v37  ;;  %v1093_v38 = vld [vmem:[#allocation5 + $0x390] sm:$0xff] }
 0x48f   :  { %2352 = vmatprep.subr.mxu0 %v2957_v39  ;;  %1169 = vmatpush2.msra.mxu1 %v1093_v38  ;;  %v1092_v39 = vld [vmem:[#allocation5 + $0x388] sm:$0xff] }
 0x490   :  { %2353 = vmatpush3.msra.mxu0 %v2964_v40  ;;  %1170 = vmatprep.subr.mxu1 %v1092_v39  ;;  %v1091_v40 = vld [vmem:[#allocation5 + $0x380] sm:$0xff] }
 0x491   :  { %2354 = vmatprep.subr.mxu0 %v3640_v10  ;;  %1171 = vmatpush2.msra.mxu1 %v1091_v40  ;;  %v1090_v10 = vld [vmem:[#allocation5 + $0x378] sm:$0xff]  ;;  %v1015_v40 = vrot.slane %v628_v33, %v2986_v47 }
 0x492   :  { %2355 = vmatpush3.msra.mxu0 %v3641_v11  ;;  %1172 = vmatprep.subr.mxu1 %v1090_v10  ;;  %v1089_v11 = vld [vmem:[#allocation5 + $0x370] sm:$0xff] }
 0x493   :  { %2362 = vmatprep.subr.mxu0 %v3293_v62  ;;  %1173 = vmatpush2.msra.mxu1 %v1089_v11 }
 0x494   :  { %1174 = vmatprep.subr.mxu1 %v1088_v56 }
 0x495   :  { %1175 = vmatpush2.msra.mxu1 %v1087_v8 }
 0x496   :  { %1176 = vmatprep.subr.mxu1 %v1086_v13 }
 0x497   :  { %1177 = vmatpush2.msra.mxu1 %v1085_v15 }
 0x498   :  { %1178 = vmatprep.subr.mxu1 %v1084_v16 }
 0x499   :  { %1179 = vmatpush2.msra.mxu1 %v1083_v18 }
 0x49a   :  { %1180 = vmatprep.subr.mxu1 %v1082_v19 }
 0x49b   :  { %1181 = vmatpush2.msra.mxu1 %v1081_v20 }
 0x49c   :  { %1182 = vmatprep.subr.mxu1 %v1080_v21 }
 0x49d   :  { %1183 = vmatpush2.msra.mxu1 %v1079_v22 }
 0x49e   :  { %1184 = vmatprep.subr.mxu1 %v1078_v23 }
 0x49f   :  { %1185 = vmatpush2.msra.mxu1 %v1077_v24 }
 0x4a0   :  { %1186 = vmatprep.subr.mxu1 %v1076_v25 }
 0x4a1   :  { %1187 = vmatpush2.msra.mxu1 %v1075_v26 }
 0x4a2   :  { %2159 = vmatprep.subr.msk.mxu1 %vm411_vm1, %v3642_v27 }
 0x533   :  { %v965_v29 = vpop.f32.mrf.mxu0 }
 0x534   :  { %v999_v44 = vmul.f32 %v992_v31, %v965_v29 }
 0x535   :  { %v967_v30 = vpop.f32.mrf.mxu0 }
 0x536   :  { %v1000_v38 = vmul.f32 %v996_v36, %v967_v30  ;;  %v1022_v11 = vmul.f32 %v999_v44, %v3078_v50 }
 0x537   :  { %v971_v32 = vpop.f32.mrf.mxu0 }
 0x538   :  { %v1001_v56 = vmul.f32 %v992_v31, %v971_v32  ;;  %v1023_v18 = vmul.f32 %v1000_v38, %v3076_v49 }
 0x539   :  { %v973_v61 = vpop.f32.mrf.mxu0 }
 0x53a   :  { %v1002_v15 = vmul.f32 %v996_v36, %v973_v61  ;;  %v1024_v23 = vmul.f32 %v1001_v56, %v3085_v55  ;;  %v3306_v55 = vld [vmem:[#allocation8] sm:$0xff] }
 0x53b   :  { %v977_v37 = vpop.f32.mrf.mxu0 }
 0x53c   :  { %v1003_v39 = vmul.f32 %v992_v31, %v977_v37  ;;  %v1025_v28 = vmul.f32 %v1002_v15, %v3082_v54 }
 0x53d   :  { %v979_v10 = vpop.f32.mrf.mxu0 }
 0x53e   :  { %v1018_v8 = vsub.f32 %v1011_v7, %v1003_v39  ;;  %v1004_v13 = vmul.f32 %v996_v36, %v979_v10 }
 0x53f   :  { %v983_v16 = vpop.f32.mrf.mxu0 }
 0x540   :  { %v1026_v19 = vadd.f32 %v1022_v11, %v1018_v8  ;;  %v1019_v20 = vsub.f32 %v1015_v40, %v1004_v13  ;;  %v1005_v21 = vmul.f32 %v992_v31, %v983_v16 }
 0x541   :  { %v985_v22 = vpop.f32.mrf.mxu0 }
 0x542   :  { %v1027_v24 = vadd.f32 %v1023_v18, %v1019_v20  ;;  %v1020_v25 = vsub.f32 %v1011_v7, %v1005_v21  ;;  %v1006_v26 = vmul.f32 %v996_v36, %v985_v22  ;;  %v1034_v29 = vmul.f32 0.2, %v1026_v19  ;;  %v1108_v7 = vld [vmem:[#allocation7 + $0x2] ss:$8 sm:$0x3]  ;;  %v3356_v18 = vld [vmem:[%s3623_s6 + $0x90] sm:$0xff] }
 0x543   :  { %vm1030_vm7 = vcmp.ge.f32.partialorder %v1026_v19, 0.0  ;;  %v1121_v37 = vrot.slane %v1108_v7, %v2986_v47  ;;  %v1117_v38 = vrot.slane %v1108_v7, %v2984_v45  ;;  %v3368_v20 = vld [vmem:[%s3623_s6 + $0x88] sm:$0xff]  ;;  %v1546_v7 = vld [vmem:[#allocation5 + $0x498] sm:$0xff] }
 0x544   :  { %v1028_v50 = vadd.f32 %v1024_v23, %v1020_v25  ;;  %v1021_v30 = vsub.f32 %v1015_v40, %v1006_v26  ;;  %vm1031_vm8 = vcmp.ge.f32.partialorder %v1027_v24, 0.0  ;;  %v1035_v32 = vmul.f32 0.2, %v1027_v24  ;;  %v3374_v21 = vld [vmem:[%s3623_s6 + $0x8] sm:$0xff]  ;;  %v3382_v23 = vld [vmem:[%s3623_s6 + $0x80] sm:$0xff] }
 0x545   :  { %v1038_v49 = vsel %vm1030_vm7, %v1026_v19, %v1034_v29  ;;  %v3362_v19 = vld [vmem:[%s3623_s6 + $0x10] sm:$0xff]  ;;  %3643 = vst [vmem:[#allocation15_spill] sm:$0xff] %v3382_v23 }
 0x546   :  { %v1029_v33 = vadd.f32 %v1025_v28, %v1021_v30  ;;  %v1039_v61 = vsel %vm1031_vm8, %v1027_v24, %v1035_v32  ;;  %v1036_v44 = vmul.f32 0.2, %v1028_v50  ;;  %vm1032_vm10 = vcmp.ge.f32.partialorder %v1028_v50, 0.0  ;;  %v3388_v24 = vld [vmem:[%s3623_s6] sm:$0xff]  ;;  %v1558_v28 = vld [vmem:[#allocation5 + $0x4f8] sm:$0xff]  ;;  %v1557_v29 = vld [vmem:[#allocation5 + $0x4f0] sm:$0xff] }
 0x547   :  { %1188 = vmatprep.mubr.f32.mxu1 %v1039_v61  ;;  %3644 = vst [vmem:[#allocation16_spill] sm:$0xff] %v3388_v24  ;;  %v1555_v30 = vld [vmem:[#allocation5 + $0x4e0] sm:$0xff]  ;;  %v1554_v32 = vld [vmem:[#allocation5 + $0x4d8] sm:$0xff]  ;;  %v1552_v61 = vld [vmem:[#allocation5 + $0x4c8] sm:$0xff] }
 0x548   :  { %1189 = vmatmul.mubr.f32.vlgmr.msra.gmra.mxu1 %v1038_v49  ;;  %vm1033_vm9 = vcmp.ge.f32.partialorder %v1029_v33, 0.0  ;;  %v1037_v31 = vmul.f32 0.2, %v1029_v33  ;;  %v1040_v36 = vsel %vm1032_vm10, %v1028_v50, %v1036_v44  ;;  %v1556_v50 = vld [vmem:[#allocation5 + $0x4e8] sm:$0xff]  ;;  %v1551_v49 = vld [vmem:[#allocation5 + $0x4c0] sm:$0xff]  ;;  %v1550_v44 = vld [vmem:[#allocation5 + $0x4b8] sm:$0xff] }
 0x549   :  { %2160 = vmatpush1.msk.msra.mxu1 %vm411_vm1, %v3306_v55 }
 0x54a   :  { %v1041_v54 = vsel %vm1033_vm9, %v1029_v33, %v1037_v31  ;;  %2400 = vmatprep.subr.mxu1 %v3293_v62  ;;  %v1553_v33 = vld [vmem:[#allocation5 + $0x4d0] sm:$0xff] }
 0x54b   :  { %1194 = vmatprep.mubr.f32.mxu1 %v1041_v54  ;;  %v1549_v31 = vld [vmem:[#allocation5 + $0x4b0] sm:$0xff]  ;;  %v1548_v54 = vld [vmem:[#allocation5 + $0x4a8] sm:$0xff] }
 0x54c   :  { %1195 = vmatmul.mubr.f32.gmra.mxu1 %v1040_v36  ;;  %v1547_v36 = vld [vmem:[#allocation5 + $0x4a0] sm:$0xff] }
 0x54d   :  { %1447 = vmatprep.mubr.f32.mxu1 %v3639_v42 }
 0x608   :  { %v1190_v39 = vpop.f32.mrf.mxu1 }
 0x609   :  { %v3316_v11 = vadd.f32 %v1190_v39, %v1117_v38  ;;  %v1543_v39 = vld [vmem:[#allocation5 + $0x480] sm:$0xff] }
 0x60a   :  { %v1192_v40 = vpop.f32.mrf.mxu1 }
 0x60b   :  { %v3314_v10 = vadd.f32 %v1192_v40, %v1121_v37  ;;  %v1278_v22 = vmul.f32 %v3316_v11, %v3316_v11  ;;  %v1542_v40 = vld [vmem:[#allocation5 + $0x478] sm:$0xff] }
 0x60c   :  { %v1196_v56 = vpop.f32.mrf.mxu1 }
 0x60d   :  { %1265 = vmatprep.mubr.f32.mxu0 %v3314_v10  ;;  %v3323_v15 = vadd.f32 %v1196_v56, %v1117_v38  ;;  %v1279_v16 = vmul.f32 %v3314_v10, %v3314_v10  ;;  %v1544_v38 = vld [vmem:[#allocation5 + $0x488] sm:$0xff]  ;;  %v1541_v56 = vld [vmem:[#allocation5 + $0x470] sm:$0xff] }
 0x60e   :  { %v1198_v8 = vpop.f32.mrf.mxu1  ;;  %1266 = vmatmul.mubr.f32.vlgmr.msra.gmra.mxu0 %v3316_v11 }
 0x60f   :  { %v3320_v13 = vadd.f32 %v1198_v8, %v1121_v37  ;;  %2363 = vmatpush3.msra.mxu0 %v3132_v34  ;;  %v1280_v26 = vmul.f32 %v3323_v15, %v3323_v15  ;;  %v1545_v37 = vld [vmem:[#allocation5 + $0x490] sm:$0xff]  ;;  %v1540_v8 = vld [vmem:[#allocation5 + $0x468] sm:$0xff] }
 0x610   :  { %2364 = vmatprep.subr.mxu0 %v3138_v35 }
 0x611   :  { %2365 = vmatpush3.msra.mxu0 %v3144_v58  ;;  %1270 = vmatprep.mubr.f32.mxu0 %v3320_v13  ;;  %v1281_v25 = vmul.f32 %v3320_v13, %v3320_v13 }
 0x612   :  { %2366 = vmatprep.subr.mxu0 %v3151_v60  ;;  %1271 = vmatmul.mubr.f32.gmra.mxu0 %v3323_v15 }
 0x613   :  { %2367 = vmatpush3.msra.mxu0 %v3158_v12  ;;  %1346 = vmatprep.mubr.f32.mxu0 %v1279_v16  ;;  %v1539_v16 = vld [vmem:[#allocation5 + $0x460] sm:$0xff] }
 0x614   :  { %2368 = vmatprep.subr.mxu0 %v3164_v1 }
 0x615   :  { %2369 = vmatpush3.msra.mxu0 %v3170_v2 }
 0x616   :  { %2370 = vmatprep.subr.mxu0 %v3177_v3 }
 0x617   :  { %2371 = vmatpush3.msra.mxu0 %v3184_v4 }
 0x618   :  { %2372 = vmatprep.subr.mxu0 %v3190_v6 }
 0x619   :  { %2373 = vmatpush3.msra.mxu0 %v3196_v51 }
 0x61a   :  { %2374 = vmatprep.subr.mxu0 %v3203_v5 }
 0x61b   :  { %2375 = vmatpush3.msra.mxu0 %v3209_v14 }
 0x61c   :  { %2376 = vmatprep.subr.mxu0 %v3215_v17 }
 0x61d   :  { %2377 = vmatpush3.msra.mxu0 %v3221_v48 }
 0x61e   :  { %2378 = vmatprep.subr.mxu0 %v3227_v53 }
 0x61f   :  { %2379 = vmatpush3.msra.mxu0 %v3233_v46 }
 0x620   :  { %2380 = vmatprep.subr.mxu0 %v3239_v52 }
 0x621   :  { %2381 = vmatpush3.msra.mxu0 %v3245_v0 }
 0x622   :  { %2382 = vmatprep.subr.mxu0 %v3251_v57 }
 0x623   :  { %2383 = vmatpush3.msra.mxu0 %v3257_v59 }
 0x624   :  { %2384 = vmatprep.subr.mxu0 %v3263_v63 }
 0x625   :  { %2385 = vmatpush3.msra.mxu0 %v3269_v41 }
 0x626   :  { %2386 = vmatprep.subr.mxu0 %v3275_v9 }
 0x627   :  { %2387 = vmatpush3.msra.mxu0 %v3281_v43 }
 0x628   :  { %2388 = vmatprep.subr.mxu0 %v3356_v18 }
 0x629   :  { %2389 = vmatpush3.msra.mxu0 %v3362_v19 }
 0x62a   :  { %2390 = vmatprep.subr.mxu0 %v3368_v20 }
 0x62b   :  { %2391 = vmatpush3.msra.mxu0 %v3374_v21 }
 0x62c   :  { %2392 = vmatprep.subr.mxu0 %v3382_v23 }
 0x62d   :  { %2393 = vmatpush3.msra.mxu0 %v3388_v24 }
 0x62e   :  { %1347 = vmatmul.mubr.f32.vlgmr.msra.gmra.mxu0 %v1278_v22  ;;  %1608 = vmatprep.subr.mxu0 %v1558_v28  ;;  %v1538_v22 = vld [vmem:[#allocation5 + $0x458] sm:$0xff]  ;;  %v1535_v28 = vld [vmem:[#allocation5 + $0x440] sm:$0xff] }
 0x62f   :  { %1351 = vmatprep.mubr.f32.mxu0 %v1281_v25  ;;  %1609 = vmatpush1.msra.mxu0 %v1557_v29  ;;  %v1537_v25 = vld [vmem:[#allocation5 + $0x450] sm:$0xff]  ;;  %v1534_v29 = vld [vmem:[#allocation5 + $0x438] sm:$0xff] }
 0x630   :  { %1610 = vmatprep.subr.mxu0 %v1556_v50  ;;  %v1533_v50 = vld [vmem:[#allocation5 + $0x430] sm:$0xff] }
 0x631   :  { %1611 = vmatpush1.msra.mxu0 %v1555_v30  ;;  %v1532_v30 = vld [vmem:[#allocation5 + $0x428] sm:$0xff] }
 0x632   :  { %1352 = vmatmul.mubr.f32.gmra.mxu0 %v1280_v26  ;;  %1612 = vmatprep.subr.mxu0 %v1554_v32  ;;  %v1536_v26 = vld [vmem:[#allocation5 + $0x448] sm:$0xff]  ;;  %v1531_v32 = vld [vmem:[#allocation5 + $0x420] sm:$0xff] }
 0x633   :  { %1613 = vmatpush1.msra.mxu0 %v1553_v33  ;;  %v1530_v33 = vld [vmem:[#allocation5 + $0x418] sm:$0xff] }
 0x634   :  { %1614 = vmatprep.subr.mxu0 %v1552_v61  ;;  %v1529_v61 = vld [vmem:[#allocation5 + $0x410] sm:$0xff] }
 0x635   :  { %1615 = vmatpush1.msra.mxu0 %v1551_v49  ;;  %v1528_v49 = vld [vmem:[#allocation5 + $0x408] sm:$0xff] }
 0x636   :  { %1616 = vmatprep.subr.mxu0 %v1550_v44  ;;  %v1527_v44 = vld [vmem:[#allocation5 + $0x400] sm:$0xff] }
 0x637   :  { %1617 = vmatpush1.msra.mxu0 %v1549_v31  ;;  %v1590_v31 = vld [vmem:[#allocation5 + $0x5f8] sm:$0xff] }
 0x638   :  { %1618 = vmatprep.subr.mxu0 %v1548_v54  ;;  %v1589_v54 = vld [vmem:[#allocation5 + $0x5f0] sm:$0xff] }
 0x639   :  { %1619 = vmatpush1.msra.mxu0 %v1547_v36  ;;  %v1588_v36 = vld [vmem:[#allocation5 + $0x5e8] sm:$0xff] }
 0x63a   :  { %1620 = vmatprep.subr.mxu0 %v1546_v7  ;;  %v1587_v7 = vld [vmem:[#allocation5 + $0x5e0] sm:$0xff] }
 0x63b   :  { %1621 = vmatpush1.msra.mxu0 %v1545_v37  ;;  %v1586_v37 = vld [vmem:[#allocation5 + $0x5d8] sm:$0xff] }
 0x63c   :  { %1622 = vmatprep.subr.mxu0 %v1544_v38  ;;  %v1585_v38 = vld [vmem:[#allocation5 + $0x5d0] sm:$0xff] }
 0x63d   :  { %1623 = vmatpush1.msra.mxu0 %v1543_v39  ;;  %v1584_v39 = vld [vmem:[#allocation5 + $0x5c8] sm:$0xff] }
 0x63e   :  { %1624 = vmatprep.subr.mxu0 %v1542_v40  ;;  %v1583_v40 = vld [vmem:[#allocation5 + $0x5c0] sm:$0xff] }
 0x63f   :  { %1625 = vmatpush1.msra.mxu0 %v1541_v56  ;;  %v1582_v56 = vld [vmem:[#allocation5 + $0x5b8] sm:$0xff] }
 0x640   :  { %1626 = vmatprep.subr.mxu0 %v1540_v8  ;;  %v1581_v8 = vld [vmem:[#allocation5 + $0x5b0] sm:$0xff] }
 0x641   :  { %1627 = vmatpush1.msra.mxu0 %v1539_v16  ;;  %v1580_v16 = vld [vmem:[#allocation5 + $0x5a8] sm:$0xff] }
 0x642   :  { %1628 = vmatprep.subr.mxu0 %v1538_v22 }
 0x643   :  { %1629 = vmatpush1.msra.mxu0 %v1537_v25 }
 0x644   :  { %1630 = vmatprep.subr.mxu0 %v1536_v26 }
 0x645   :  { %1631 = vmatpush1.msra.mxu0 %v1535_v28 }
 0x646   :  { %1632 = vmatprep.subr.mxu0 %v1534_v29 }
 0x647   :  { %1633 = vmatpush1.msra.mxu0 %v1533_v50 }
 0x648   :  { %1634 = vmatprep.subr.mxu0 %v1532_v30 }
 0x649   :  { %1635 = vmatpush1.msra.mxu0 %v1531_v32 }
 0x64a   :  { %1636 = vmatprep.subr.mxu0 %v1530_v33 }
 0x64b   :  { %1637 = vmatpush1.msra.mxu0 %v1529_v61 }
 0x64c   :  { %1638 = vmatprep.subr.mxu0 %v1528_v49 }
 0x64d   :  { %1639 = vmatpush1.msra.mxu0 %v1527_v44 }
 0x64e   :  { %1640 = vmatprep.subr.mxu0 %v1590_v31 }
 0x64f   :  { %1641 = vmatpush2.msra.mxu0 %v1589_v54 }
 0x650   :  { %1642 = vmatprep.subr.mxu0 %v1588_v36 }
 0x651   :  { %1643 = vmatpush2.msra.mxu0 %v1587_v7 }
 0x652   :  { %1644 = vmatprep.subr.mxu0 %v1586_v37 }
 0x653   :  { %1645 = vmatpush2.msra.mxu0 %v1585_v38 }
 0x654   :  { %1646 = vmatprep.subr.mxu0 %v1584_v39 }
 0x655   :  { %1647 = vmatpush2.msra.mxu0 %v1583_v40 }
 0x656   :  { %1648 = vmatprep.subr.mxu0 %v1582_v56 }
 0x657   :  { %1649 = vmatpush2.msra.mxu0 %v1581_v8 }
 0x658   :  { %1650 = vmatprep.subr.mxu0 %v1580_v16 }
 0x6ce   :  { %v2356_v22 = vpop.f32.mrf.mxu0 }
 0x6d0   :  { %v2357_v25 = vpop.f32.mrf.mxu0 }
 0x6d1   :  { %v2358_v28 = vadd.f32 %v2357_v25, %v2356_v22 }
 0x6d2   :  { %v2359_v26 = vpop.f32.mrf.mxu0 }
 0x6d3   :  { %v1276_v30 = vmul.f32 0.015625, %v2358_v28 }
 0x6d4   :  { %v2360_v29 = vpop.f32.mrf.mxu0 }
 0x6d5   :  { %v2361_v32 = vadd.f32 %v2360_v29, %v2359_v26  ;;  %v1359_v44 = vmul.f32 %v1276_v30, %v1276_v30 }
 0x6d7   :  { %v1277_v31 = vmul.f32 0.015625, %v2361_v32  ;;  %v1577_v32 = vld [vmem:[#allocation5 + $0x590] sm:$0xff] }
 0x6d9   :  { %v1360_v38 = vmul.f32 %v1277_v31, %v1277_v31 }
 0x6ee   :  { %v2394_v50 = vpop.f32.mrf.mxu0 }
 0x6f0   :  { %v2395_v33 = vpop.f32.mrf.mxu0 }
 0x6f1   :  { %v2396_v61 = vadd.f32 %v2395_v33, %v2394_v50  ;;  %v1579_v50 = vld [vmem:[#allocation5 + $0x5a0] sm:$0xff]  ;;  %v1576_v33 = vld [vmem:[#allocation5 + $0x588] sm:$0xff] }
 0x6f2   :  { %v2397_v49 = vpop.f32.mrf.mxu0  ;;  %1651 = vmatpush2.msra.mxu0 %v1579_v50 }
 0x6f3   :  { %v1357_v54 = vmul.f32 0.015625, %v2396_v61  ;;  %v1575_v61 = vld [vmem:[#allocation5 + $0x580] sm:$0xff] }
 0x6f4   :  { %v2398_v36 = vpop.f32.mrf.mxu0 }
 0x6f5   :  { %v1361_v7 = vsub.f32 %v1357_v54, %v1359_v44  ;;  %v2399_v37 = vadd.f32 %v2398_v36, %v2397_v49  ;;  %v1574_v49 = vld [vmem:[#allocation5 + $0x578] sm:$0xff]  ;;  %v1573_v44 = vld [vmem:[#allocation5 + $0x570] sm:$0xff]  ;;  %v1571_v54 = vld [vmem:[#allocation5 + $0x560] sm:$0xff] }
 0x6f6   :  { %v1570_v36 = vld [vmem:[#allocation5 + $0x558] sm:$0xff] }
 0x6f7   :  { %v1363_v39 = vmax.f32 %v1361_v7, 0.0  ;;  %v1358_v40 = vmul.f32 0.015625, %v2399_v37  ;;  %v1568_v7 = vld [vmem:[#allocation5 + $0x548] sm:$0xff]  ;;  %v1567_v37 = vld [vmem:[#allocation5 + $0x540] sm:$0xff] }
 0x6f9   :  { %v1365_v56 = vadd.f32 1e-05, %v1363_v39  ;;  %v1362_v8 = vsub.f32 %v1358_v40, %v1360_v38  ;;  %v1566_v38 = vld [vmem:[#allocation5 + $0x538] sm:$0xff]  ;;  %v1565_v39 = vld [vmem:[#allocation5 + $0x530] sm:$0xff]  ;;  %v1564_v40 = vld [vmem:[#allocation5 + $0x528] sm:$0xff] }
 0x6fb   :  { %2533 = vrsqrt.f32 %v1365_v56  ;;  %v1364_v16 = vmax.f32 %v1362_v8, 0.0  ;;  %v1563_v56 = vld [vmem:[#allocation5 + $0x520] sm:$0xff]  ;;  %v1562_v8 = vld [vmem:[#allocation5 + $0x518] sm:$0xff] }
 0x6fd   :  { %v1366_v22 = vadd.f32 1e-05, %v1364_v16  ;;  %v1561_v16 = vld [vmem:[#allocation5 + $0x510] sm:$0xff] }
 0x6ff   :  { %2535 = vrsqrt.f32 %v1366_v22  ;;  %v1560_v22 = vld [vmem:[#allocation5 + $0x508] sm:$0xff] }
 0x708   :  { %v2534_v25 = vpop.eup %2533 }
 0x709   :  { %2161 = vmatmul.mubr.msk.f32.vlgmr.msra.gmra.mxu1 %vm398_vm2, %v2534_v25  ;;  %v1369_v28 = vmul.f32 %v2534_v25, %v1276_v30  ;;  %v1578_v30 = vld [vmem:[#allocation5 + $0x598] sm:$0xff]  ;;  %v1559_v25 = vld [vmem:[#allocation5 + $0x500] sm:$0xff] }
 0x70a   :  { %1453 = vmatprep.mubr.f32.mxu1 %v3639_v42  ;;  %2401 = vmatpush3.msra.mxu1 %v3132_v34 }
 0x70b   :  { %2402 = vmatprep.subr.mxu1 %v3138_v35  ;;  %1652 = vmatprep.subr.mxu0 %v1578_v30 }
 0x70c   :  { %v2536_v26 = vpop.eup %2535  ;;  %2403 = vmatpush3.msra.mxu1 %v3144_v58  ;;  %1653 = vmatpush2.msra.mxu0 %v1577_v32  ;;  %v1112_v32 = vld [vmem:[#allocation7 + $0x12] ss:$8 sm:$0x3] }
 0x70d   :  { %2162 = vmatmul.mubr.msk.f32.gmra.mxu1 %vm398_vm2, %v2536_v26  ;;  %2404 = vmatprep.subr.mxu1 %v3151_v60  ;;  %v1370_v29 = vmul.f32 %v2536_v26, %v1277_v31  ;;  %v1572_v31 = vld [vmem:[#allocation5 + $0x568] sm:$0xff] }
 0x70e   :  { %1459 = vmatprep.mubr.f32.mxu1 %v3639_v42  ;;  %2405 = vmatpush3.msra.mxu1 %v3158_v12  ;;  %v1110_v26 = vld [vmem:[#allocation7 + $0x6] ss:$8 sm:$0x3] }
 0x70f   :  { %2406 = vmatprep.subr.mxu1 %v3164_v1  ;;  %1654 = vmatprep.subr.mxu0 %v1576_v33  ;;  %v1476_v50 = vrot.slane %v1110_v26, %v2984_v45  ;;  %v1480_v33 = vrot.slane %v1110_v26, %v2986_v47 }
 0x710   :  { %2407 = vmatpush3.msra.mxu1 %v3170_v2  ;;  %1655 = vmatpush2.msra.mxu0 %v1575_v61 }
 0x711   :  { %2163 = vmatmul.mubr.msk.f32.gmra.mxu1 %vm398_vm2, %v1369_v28  ;;  %2408 = vmatprep.subr.mxu1 %v3177_v3 }
 0x712   :  { %1465 = vmatprep.mubr.f32.mxu1 %v3639_v42  ;;  %2409 = vmatpush3.msra.mxu1 %v3184_v4 }
 0x713   :  { %2410 = vmatprep.subr.mxu1 %v3190_v6  ;;  %1656 = vmatprep.subr.mxu0 %v1574_v49 }
 0x714   :  { %2411 = vmatpush3.msra.mxu1 %v3196_v51  ;;  %1657 = vmatpush2.msra.mxu0 %v1573_v44  ;;  %v1495_v44 = vrot.slane %v1112_v32, %v2984_v45 }
 0x715   :  { %2164 = vmatmul.mubr.msk.f32.gmra.mxu1 %vm398_vm2, %v1370_v29  ;;  %2412 = vmatprep.subr.mxu1 %v3203_v5 }
 0x716   :  { %2413 = vmatpush3.msra.mxu1 %v3209_v14  ;;  %1658 = vmatprep.subr.mxu0 %v1572_v31 }
 0x717   :  { %2414 = vmatprep.subr.mxu1 %v3215_v17  ;;  %1659 = vmatpush2.msra.mxu0 %v1571_v54 }
 0x718   :  { %2415 = vmatpush3.msra.mxu1 %v3221_v48  ;;  %1660 = vmatprep.subr.mxu0 %v1570_v36 }
 0x719   :  { %2416 = vmatprep.subr.mxu1 %v3227_v53 }
 0x71a   :  { %2417 = vmatpush3.msra.mxu1 %v3233_v46 }
 0x71b   :  { %2418 = vmatprep.subr.mxu1 %v3239_v52 }
 0x71c   :  { %2419 = vmatpush3.msra.mxu1 %v3245_v0 }
 0x71d   :  { %2420 = vmatprep.subr.mxu1 %v3251_v57 }
 0x71e   :  { %2421 = vmatpush3.msra.mxu1 %v3257_v59 }
 0x71f   :  { %2422 = vmatprep.subr.mxu1 %v3263_v63 }
 0x720   :  { %2423 = vmatpush3.msra.mxu1 %v3269_v41 }
 0x721   :  { %2424 = vmatprep.subr.mxu1 %v3275_v9 }
 0x722   :  { %2425 = vmatpush3.msra.mxu1 %v3281_v43 }
 0x723   :  { %2426 = vmatprep.subr.mxu1 %v3356_v18 }
 0x724   :  { %2427 = vmatpush3.msra.mxu1 %v3362_v19 }
 0x725   :  { %2428 = vmatprep.subr.mxu1 %v3368_v20 }
 0x726   :  { %2429 = vmatpush3.msra.mxu1 %v3374_v21 }
 0x727   :  { %2430 = vmatprep.subr.mxu1 %v3382_v23 }
 0x728   :  { %2431 = vmatpush3.msra.mxu1 %v3388_v24 }
 0x729   :  { %2438 = vmatprep.subr.mxu1 %v3293_v62  ;;  %v1569_v62 = vld [vmem:[#allocation5 + $0x550] sm:$0xff] }
 0x72a   :  { %1661 = vmatpush2.msra.mxu0 %v1569_v62  ;;  %v1499_v62 = vrot.slane %v1112_v32, %v2986_v47 }
 0x72b   :  { %1662 = vmatprep.subr.mxu0 %v1568_v7 }
 0x72c   :  { %1663 = vmatpush2.msra.mxu0 %v1567_v37 }
 0x72d   :  { %1664 = vmatprep.subr.mxu0 %v1566_v38 }
 0x72e   :  { %1665 = vmatpush2.msra.mxu0 %v1565_v39 }
 0x72f   :  { %1666 = vmatprep.subr.mxu0 %v1564_v40 }
 0x730   :  { %1667 = vmatpush2.msra.mxu0 %v1563_v56 }
 0x731   :  { %1668 = vmatprep.subr.mxu0 %v1562_v8 }
 0x732   :  { %1669 = vmatpush2.msra.mxu0 %v1561_v16 }
 0x733   :  { %1670 = vmatprep.subr.mxu0 %v1560_v22 }
 0x734   :  { %1671 = vmatpush2.msra.mxu0 %v1559_v25 }
 0x735   :  { %2165 = vmatprep.subr.msk.mxu0 %vm411_vm1, %v3642_v27 }
 0x7c9   :  { %v1449_v28 = vpop.f32.mrf.mxu1 }
 0x7ca   :  { %v1483_v49 = vmul.f32 %v1476_v50, %v1449_v28 }
 0x7cb   :  { %v1451_v29 = vpop.f32.mrf.mxu1 }
 0x7cc   :  { %v1484_v54 = vmul.f32 %v1480_v33, %v1451_v29  ;;  %v1506_v27 = vmul.f32 %v1483_v49, %v3316_v11 }
 0x7cd   :  { %v1455_v30 = vpop.f32.mrf.mxu1 }
 0x7ce   :  { %v1485_v37 = vmul.f32 %v1476_v50, %v1455_v30  ;;  %v1507_v8 = vmul.f32 %v1484_v54, %v3314_v10 }
 0x7cf   :  { %v1457_v61 = vpop.f32.mrf.mxu1 }
 0x7d0   :  { %v1486_v40 = vmul.f32 %v1480_v33, %v1457_v61  ;;  %v1508_v28 = vmul.f32 %v1485_v37, %v3323_v15 }
 0x7d1   :  { %v1461_v31 = vpop.f32.mrf.mxu1 }
 0x7d2   :  { %v1487_v36 = vmul.f32 %v1476_v50, %v1461_v31  ;;  %v1509_v32 = vmul.f32 %v1486_v40, %v3320_v13 }
 0x7d3   :  { %v1463_v7 = vpop.f32.mrf.mxu1 }
 0x7d4   :  { %v1502_v38 = vsub.f32 %v1495_v44, %v1487_v36  ;;  %v1488_v39 = vmul.f32 %v1480_v33, %v1463_v7 }
 0x7d5   :  { %v1467_v56 = vpop.f32.mrf.mxu1 }
 0x7d6   :  { %v1510_v16 = vadd.f32 %v1506_v27, %v1502_v38  ;;  %v1503_v22 = vsub.f32 %v1499_v62, %v1488_v39  ;;  %v1489_v25 = vmul.f32 %v1476_v50, %v1467_v56 }
 0x7d7   :  { %v1469_v26 = vpop.f32.mrf.mxu1 }
 0x7d8   :  { %v1511_v29 = vadd.f32 %v1507_v8, %v1503_v22  ;;  %v1504_v31 = vsub.f32 %v1495_v44, %v1489_v25  ;;  %v1490_v24 = vmul.f32 %v1480_v33, %v1469_v26  ;;  %v1518_v23 = vmul.f32 0.2, %v1510_v16 }
 0x7d9   :  { %vm1514_vm11 = vcmp.ge.f32.partialorder %v1510_v16, 0.0 }
 0x7da   :  { %v1512_v11 = vadd.f32 %v1508_v28, %v1504_v31  ;;  %v1505_v30 = vsub.f32 %v1499_v62, %v1490_v24  ;;  %vm1515_vm12 = vcmp.ge.f32.partialorder %v1511_v29, 0.0  ;;  %v1519_v61 = vmul.f32 0.2, %v1511_v29  ;;  %v1592_v24 = vld [vmem:[#allocation7 + $0x3] ss:$8 sm:$0x3] }
 0x7db   :  { %v1522_v10 = vsel %vm1514_vm11, %v1510_v16, %v1518_v23  ;;  %v1605_v33 = vrot.slane %v1592_v24, %v2986_v47  ;;  %v1601_v44 = vrot.slane %v1592_v24, %v2984_v45  ;;  %v2017_v24 = vld [vmem:[%s3620_s3 + $0x38] sm:$0xff] }
 0x7dc   :  { %v1513_v49 = vadd.f32 %v1509_v32, %v1505_v30  ;;  %v1523_v36 = vsel %vm1515_vm12, %v1511_v29, %v1519_v61  ;;  %v1520_v54 = vmul.f32 0.2, %v1512_v11  ;;  %vm1516_vm14 = vcmp.ge.f32.partialorder %v1512_v11, 0.0 }
 0x7dd   :  { %1672 = vmatprep.mubr.f32.mxu0 %v1523_v36 }
 0x7de   :  { %1673 = vmatmul.mubr.f32.vlgmr.msra.gmra.mxu0 %v1522_v10  ;;  %vm1517_vm13 = vcmp.ge.f32.partialorder %v1513_v49, 0.0  ;;  %v1521_v50 = vmul.f32 0.2, %v1513_v49  ;;  %v1524_v13 = vsel %vm1516_vm14, %v1512_v11, %v1520_v54  ;;  %v2020_v10 = vld [vmem:[%s3620_s3 + $0x50] sm:$0xff]  ;;  %v2035_v54 = vld [vmem:[%s3620_s3 + $0xc8] sm:$0xff] }
 0x7df   :  { %2166 = vmatpush1.msk.msra.mxu0 %vm411_vm1, %v3306_v55 }
 0x7e0   :  { %v1525_v15 = vsel %vm1517_vm13, %v1513_v49, %v1521_v50  ;;  %v2019_v50 = vld [vmem:[%s3620_s3 + $0x48] sm:$0xff] }
 0x7e1   :  { %1678 = vmatprep.mubr.f32.mxu0 %v1525_v15  ;;  %v2018_v15 = vld [vmem:[%s3620_s3 + $0x40] sm:$0xff] }
 0x7e2   :  { %1679 = vmatmul.mubr.f32.gmra.mxu0 %v1524_v13  ;;  %v2033_v13 = vld [vmem:[%s3620_s3 + $0xb8] sm:$0xff] }
 0x7e3   :  { %1931 = vmatprep.mubr.f32.mxu0 %v3639_v42 }
 0x89e   :  { %v1674_v23 = vpop.f32.mrf.mxu0 }
 0x89f   :  { %v3451_v27 = vadd.f32 %v1674_v23, %v1601_v44  ;;  %v2031_v23 = vld [vmem:[%s3620_s3 + $0xa8] sm:$0xff] }
 0x8a0   :  { %v1676_v62 = vpop.f32.mrf.mxu0 }
 0x8a1   :  { %v3449_v7 = vadd.f32 %v1676_v62, %v1605_v33  ;;  %v2015_v62 = vld [vmem:[%s3620_s3 + $0x28] sm:$0xff] }
 0x8a2   :  { %v1680_v37 = vpop.f32.mrf.mxu0 }
 0x8a3   :  { %1749 = vmatprep.mubr.f32.mxu1 %v3449_v7  ;;  %v3458_v39 = vadd.f32 %v1680_v37, %v1601_v44  ;;  %v1763_v40 = vmul.f32 %v3449_v7, %v3449_v7  ;;  %v2016_v44 = vld [vmem:[%s3620_s3 + $0x30] sm:$0xff]  ;;  %v2030_v37 = vld [vmem:[%s3620_s3 + $0xa0] sm:$0xff] }
 0x8a4   :  { %v1682_v55 = vpop.f32.mrf.mxu0  ;;  %1750 = vmatmul.mubr.f32.vlgmr.msra.gmra.mxu1 %v3451_v27 }
 0x8a5   :  { %v3455_v38 = vadd.f32 %v1682_v55, %v1605_v33  ;;  %2439 = vmatpush3.msra.mxu1 %v3132_v34  ;;  %v1762_v34 = vmul.f32 %v3451_v27, %v3451_v27  ;;  %v2032_v33 = vld [vmem:[%s3620_s3 + $0xb0] sm:$0xff]  ;;  %v2014_v55 = vld [vmem:[%s3620_s3 + $0x20] sm:$0xff] }
 0x8a6   :  { %2440 = vmatprep.subr.mxu1 %v3138_v35  ;;  %v3645_v35 = vld [vmem:[#allocation15_spill] sm:$0xff] }
 0x8a7   :  { %2441 = vmatpush3.msra.mxu1 %v3144_v58  ;;  %1754 = vmatprep.mubr.f32.mxu1 %v3455_v38  ;;  %v3646_v58 = vld [vmem:[#allocation16_spill] sm:$0xff] }
 0x8a8   :  { %2442 = vmatprep.subr.mxu1 %v3151_v60  ;;  %1755 = vmatmul.mubr.f32.gmra.mxu1 %v3458_v39  ;;  %v1765_v60 = vmul.f32 %v3455_v38, %v3455_v38 }
 0x8a9   :  { %2443 = vmatpush3.msra.mxu1 %v3158_v12  ;;  %1830 = vmatprep.mubr.f32.mxu1 %v1763_v40  ;;  %v1764_v12 = vmul.f32 %v3458_v39, %v3458_v39  ;;  %v2029_v40 = vld [vmem:[%s3620_s3 + $0x98] sm:$0xff] }
 0x8aa   :  { %2444 = vmatprep.subr.mxu1 %v3164_v1  ;;  %v2041_v1 = vld [vmem:[%s3620_s3 + $0xf8] sm:$0xff] }
 0x8ab   :  { %2445 = vmatpush3.msra.mxu1 %v3170_v2  ;;  %v2025_v2 = vld [vmem:[%s3620_s3 + $0x78] sm:$0xff] }
 0x8ac   :  { %2446 = vmatprep.subr.mxu1 %v3177_v3  ;;  %v2040_v3 = vld [vmem:[%s3620_s3 + $0xf0] sm:$0xff] }
 0x8ad   :  { %2447 = vmatpush3.msra.mxu1 %v3184_v4  ;;  %v2024_v4 = vld [vmem:[%s3620_s3 + $0x70] sm:$0xff] }
 0x8ae   :  { %2448 = vmatprep.subr.mxu1 %v3190_v6  ;;  %v2039_v6 = vld [vmem:[%s3620_s3 + $0xe8] sm:$0xff] }
 0x8af   :  { %2449 = vmatpush3.msra.mxu1 %v3196_v51  ;;  %v2023_v51 = vld [vmem:[%s3620_s3 + $0x68] sm:$0xff] }
 0x8b0   :  { %2450 = vmatprep.subr.mxu1 %v3203_v5  ;;  %v2038_v5 = vld [vmem:[%s3620_s3 + $0xe0] sm:$0xff] }
 0x8b1   :  { %2451 = vmatpush3.msra.mxu1 %v3209_v14  ;;  %v2022_v14 = vld [vmem:[%s3620_s3 + $0x60] sm:$0xff] }
 0x8b2   :  { %2452 = vmatprep.subr.mxu1 %v3215_v17  ;;  %v2037_v17 = vld [vmem:[%s3620_s3 + $0xd8] sm:$0xff] }
 0x8b3   :  { %2453 = vmatpush3.msra.mxu1 %v3221_v48  ;;  %v2021_v48 = vld [vmem:[%s3620_s3 + $0x58] sm:$0xff] }
 0x8b4   :  { %2454 = vmatprep.subr.mxu1 %v3227_v53  ;;  %v2036_v53 = vld [vmem:[%s3620_s3 + $0xd0] sm:$0xff] }
 0x8b5   :  { %2455 = vmatpush3.msra.mxu1 %v3233_v46 }
 0x8b6   :  { %2456 = vmatprep.subr.mxu1 %v3239_v52 }
 0x8b7   :  { %2457 = vmatpush3.msra.mxu1 %v3245_v0 }
 0x8b8   :  { %2458 = vmatprep.subr.mxu1 %v3251_v57 }
 0x8b9   :  { %2459 = vmatpush3.msra.mxu1 %v3257_v59 }
 0x8ba   :  { %2460 = vmatprep.subr.mxu1 %v3263_v63 }
 0x8bb   :  { %2461 = vmatpush3.msra.mxu1 %v3269_v41 }
 0x8bc   :  { %2462 = vmatprep.subr.mxu1 %v3275_v9 }
 0x8bd   :  { %2463 = vmatpush3.msra.mxu1 %v3281_v43 }
 0x8be   :  { %2464 = vmatprep.subr.mxu1 %v3356_v18 }
 0x8bf   :  { %2465 = vmatpush3.msra.mxu1 %v3362_v19 }
 0x8c0   :  { %2466 = vmatprep.subr.mxu1 %v3368_v20 }
 0x8c1   :  { %2467 = vmatpush3.msra.mxu1 %v3374_v21 }
 0x8c2   :  { %2468 = vmatprep.subr.mxu1 %v3645_v35  ;;  %v2028_v35 = vld [vmem:[%s3620_s3 + $0x90] sm:$0xff] }
 0x8c3   :  { %2469 = vmatpush3.msra.mxu1 %v3646_v58  ;;  %v2012_v58 = vld [vmem:[%s3620_s3 + $0x10] sm:$0xff] }
 0x8c4   :  { %1831 = vmatmul.mubr.f32.vlgmr.msra.gmra.mxu1 %v1762_v34  ;;  %2476 = vmatprep.subr.mxu1 %v2041_v1  ;;  %v2013_v34 = vld [vmem:[%s3620_s3 + $0x18] sm:$0xff]  ;;  %v2026_v1 = vld [vmem:[%s3620_s3 + $0x80] sm:$0xff] }
 0x8c5   :  { %1835 = vmatprep.mubr.f32.mxu1 %v1765_v60  ;;  %2477 = vmatpush3.msra.mxu1 %v2025_v2  ;;  %v2027_v60 = vld [vmem:[%s3620_s3 + $0x88] sm:$0xff]  ;;  %v2010_v2 = vld [vmem:[%s3620_s3] sm:$0xff] }
 0x8c6   :  { %2478 = vmatprep.subr.mxu1 %v2040_v3  ;;  %v1594_v3 = vld [vmem:[#allocation7 + $0x7] ss:$8 sm:$0x3] }
 0x8c7   :  { %2479 = vmatpush3.msra.mxu1 %v2024_v4 }
 0x8c8   :  { %1836 = vmatmul.mubr.f32.gmra.mxu1 %v1764_v12  ;;  %2480 = vmatprep.subr.mxu1 %v2039_v6  ;;  %v2011_v12 = vld [vmem:[%s3620_s3 + $0x8] sm:$0xff] }
 0x8c9   :  { %2481 = vmatpush3.msra.mxu1 %v2023_v51  ;;  %v1960_v51 = vrot.slane %v1594_v3, %v2984_v45 }
 0x8ca   :  { %2482 = vmatprep.subr.mxu1 %v2038_v5 }
 0x8cb   :  { %2483 = vmatpush3.msra.mxu1 %v2022_v14  ;;  %v1596_v14 = vld [vmem:[#allocation7 + $0x13] ss:$8 sm:$0x3] }
 0x8cc   :  { %2484 = vmatprep.subr.mxu1 %v2037_v17  ;;  %v1964_v17 = vrot.slane %v1594_v3, %v2986_v47 }
 0x8cd   :  { %2485 = vmatpush3.msra.mxu1 %v2021_v48 }
 0x8ce   :  { %2486 = vmatprep.subr.mxu1 %v2036_v53 }
 0x8cf   :  { %2487 = vmatpush3.msra.mxu1 %v2020_v10  ;;  %v2171_v10 = vld [vmem:[%s3622_s5] ss:$0 sm:$0xff] }
 0x8d0   :  { %2488 = vmatprep.subr.mxu1 %v2035_v54 }
 0x8d1   :  { %2489 = vmatpush3.msra.mxu1 %v2019_v50 }
 0x964   :  { %v2432_v46 = vpop.f32.mrf.mxu1 }
 0x966   :  { %v2433_v52 = vpop.f32.mrf.mxu1 }
 0x967   :  { %v2434_v57 = vadd.f32 %v2433_v52, %v2432_v46  ;;  %v1979_v46 = vrot.slane %v1596_v14, %v2984_v45 }
 0x968   :  { %v2435_v0 = vpop.f32.mrf.mxu1 }
 0x969   :  { %v1760_v41 = vmul.f32 0.015625, %v2434_v57 }
 0x96a   :  { %v2436_v59 = vpop.f32.mrf.mxu1 }
 0x96b   :  { %v2437_v9 = vadd.f32 %v2436_v59, %v2435_v0  ;;  %v1843_v20 = vmul.f32 %v1760_v41, %v1760_v41  ;;  %v1983_v59 = vrot.slane %v1596_v14, %v2986_v47 }
 0x96d   :  { %v1761_v21 = vmul.f32 0.015625, %v2437_v9 }
 0x96f   :  { %v1844_v25 = vmul.f32 %v1761_v21, %v1761_v21 }
 0x984   :  { %v2470_v63 = vpop.f32.mrf.mxu1 }
 0x986   :  { %v2471_v43 = vpop.f32.mrf.mxu1 }
 0x987   :  { %v2472_v18 = vadd.f32 %v2471_v43, %v2470_v63 }
 0x988   :  { %v2473_v19 = vpop.f32.mrf.mxu1 }
 0x989   :  { %v1841_v56 = vmul.f32 0.015625, %v2472_v18 }
 0x98a   :  { %v2474_v8 = vpop.f32.mrf.mxu1 }
 0x98b   :  { %v1845_v16 = vsub.f32 %v1841_v56, %v1843_v20  ;;  %v2475_v22 = vadd.f32 %v2474_v8, %v2473_v19 }
 0x98d   :  { %v1847_v26 = vmax.f32 %v1845_v16, 0.0  ;;  %v1842_v28 = vmul.f32 0.015625, %v2475_v22 }
 0x98f   :  { %v1849_v29 = vadd.f32 1e-05, %v1847_v26  ;;  %v1846_v31 = vsub.f32 %v1842_v28, %v1844_v25 }
 0x991   :  { %2537 = vrsqrt.f32 %v1849_v29  ;;  %v1848_v32 = vmax.f32 %v1846_v31, 0.0 }
 0x993   :  { %v1850_v11 = vadd.f32 1e-05, %v1848_v32 }
 0x995   :  { %2539 = vrsqrt.f32 %v1850_v11 }
 0x99e   :  { %v2538_v30 = vpop.eup %2537 }
 0x99f   :  { %2167 = vmatmul.mubr.msk.f32.vlgmr.msra.gmra.mxu0 %vm398_vm2, %v2538_v30  ;;  %v1853_v49 = vmul.f32 %v2538_v30, %v1760_v41 }
 0x9a0   :  { %1937 = vmatprep.mubr.f32.mxu0 %v3639_v42 }
 0x9a2   :  { %v2540_v61 = vpop.eup %2539 }
 0x9a3   :  { %2168 = vmatmul.mubr.msk.f32.gmra.mxu0 %vm398_vm2, %v2540_v61  ;;  %v1854_v36 = vmul.f32 %v2540_v61, %v1761_v21 }
 0x9a4   :  { %1943 = vmatprep.mubr.f32.mxu0 %v3639_v42 }
 0x9a7   :  { %2169 = vmatmul.mubr.msk.f32.gmra.mxu0 %vm398_vm2, %v1853_v49 }
 0x9a8   :  { %1949 = vmatprep.mubr.f32.mxu0 %v3639_v42  ;;  %v2034_v42 = vld [vmem:[%s3620_s3 + $0xc0] sm:$0xff] }
 0x9a9   :  { %2490 = vmatprep.subr.mxu1 %v2034_v42 }
 0x9aa   :  { %2491 = vmatpush3.msra.mxu1 %v2018_v15 }
 0x9ab   :  { %2170 = vmatmul.mubr.msk.f32.gmra.mxu0 %vm398_vm2, %v1854_v36  ;;  %2492 = vmatprep.subr.mxu1 %v2033_v13 }
 0x9ac   :  { %2493 = vmatpush3.msra.mxu1 %v2017_v24 }
 0x9ad   :  { %2494 = vmatprep.subr.mxu1 %v2032_v33 }
 0x9ae   :  { %2495 = vmatpush3.msra.mxu1 %v2016_v44 }
 0x9af   :  { %2496 = vmatprep.subr.mxu1 %v2031_v23 }
 0x9b0   :  { %2497 = vmatpush3.msra.mxu1 %v2015_v62 }
 0x9b1   :  { %2498 = vmatprep.subr.mxu1 %v2030_v37 }
 0x9b2   :  { %2499 = vmatpush3.msra.mxu1 %v2014_v55 }
 0x9b3   :  { %2500 = vmatprep.subr.mxu1 %v2029_v40 }
 0x9b4   :  { %2501 = vmatpush3.msra.mxu1 %v2013_v34 }
 0x9b5   :  { %2502 = vmatprep.subr.mxu1 %v2028_v35 }
 0x9b6   :  { %2503 = vmatpush3.msra.mxu1 %v2012_v58 }
 0x9b7   :  { %2504 = vmatprep.subr.mxu1 %v2027_v60 }
 0x9b8   :  { %2505 = vmatpush3.msra.mxu1 %v2011_v12 }
 0x9b9   :  { %2506 = vmatprep.subr.mxu1 %v2026_v1 }
 0x9ba   :  { %2507 = vmatpush3.msra.mxu1 %v2010_v2 }
 0xa5f   :  { %v1933_v4 = vpop.f32.mrf.mxu0 }
 0xa60   :  { %v1967_v53 = vmul.f32 %v1960_v51, %v1933_v4 }
 0xa61   :  { %v1935_v6 = vpop.f32.mrf.mxu0 }
 0xa62   :  { %v1968_v0 = vmul.f32 %v1964_v17, %v1935_v6  ;;  %v1990_v41 = vmul.f32 %v1967_v53, %v3451_v27 }
 0xa63   :  { %v1939_v5 = vpop.f32.mrf.mxu0 }
 0xa64   :  { %v1969_v9 = vmul.f32 %v1960_v51, %v1939_v5  ;;  %v1991_v21 = vmul.f32 %v1968_v0, %v3449_v7 }
 0xa65   :  { %v1941_v48 = vpop.f32.mrf.mxu0 }
 0xa66   :  { %v1970_v19 = vmul.f32 %v1964_v17, %v1941_v48  ;;  %v1992_v45 = vmul.f32 %v1969_v9, %v3458_v39 }
 0xa67   :  { %v1945_v52 = vpop.f32.mrf.mxu0 }
 0xa68   :  { %v1971_v57 = vmul.f32 %v1960_v51, %v1945_v52  ;;  %v1993_v47 = vmul.f32 %v1970_v19, %v3455_v38 }
 0xa69   :  { %v1947_v63 = vpop.f32.mrf.mxu0 }
 0xa6a   :  { %v1986_v43 = vsub.f32 %v1979_v46, %v1971_v57  ;;  %v1972_v18 = vmul.f32 %v1964_v17, %v1947_v63 }
 0xa6b   :  { %v1951_v20 = vpop.f32.mrf.mxu0 }
 0xa6c   :  { %v1994_v56 = vadd.f32 %v1990_v41, %v1986_v43  ;;  %v1987_v8 = vsub.f32 %v1983_v59, %v1972_v18  ;;  %v1973_v16 = vmul.f32 %v1960_v51, %v1951_v20 }
 0xa6d   :  { %v1953_v22 = vpop.f32.mrf.mxu0 }
 0xa6e   :  { %v1995_v25 = vadd.f32 %v1991_v21, %v1987_v8  ;;  %v1988_v26 = vsub.f32 %v1979_v46, %v1973_v16  ;;  %v1974_v28 = vmul.f32 %v1964_v17, %v1953_v22  ;;  %v2002_v29 = vmul.f32 0.2, %v1994_v56 }
 0xa6f   :  { %vm1998_vm15 = vcmp.ge.f32.partialorder %v1994_v56, 0.0 }
 0xa70   :  { %v1996_v27 = vadd.f32 %v1992_v45, %v1988_v26  ;;  %v1989_v31 = vsub.f32 %v1983_v59, %v1974_v28  ;;  %vm1999_vm0 = vcmp.ge.f32.partialorder %v1995_v25, 0.0  ;;  %v2003_v32 = vmul.f32 0.2, %v1995_v25 }
 0xa71   :  { %v2006_v7 = vsel %vm1998_vm15, %v1994_v56, %v2002_v29 }
 0xa72   :  { %v1997_v11 = vadd.f32 %v1993_v47, %v1989_v31  ;;  %v2007_v30 = vsel %vm1999_vm0, %v1995_v25, %v2003_v32  ;;  %v2004_v61 = vmul.f32 0.2, %v1996_v27  ;;  %vm2000_vm2 = vcmp.ge.f32.partialorder %v1996_v27, 0.0 }
 0xa73   :  { %2113 = vmatprep.mubr.f32.mxu1 %v2007_v30 }
 0xa74   :  { %2114 = vmatmul.mubr.f32.vlgmr.msra.gmra.mxu1 %v2006_v7  ;;  %vm2001_vm1 = vcmp.ge.f32.partialorder %v1997_v11, 0.0  ;;  %v2005_v49 = vmul.f32 0.2, %v1997_v11  ;;  %v2008_v36 = vsel %vm2000_vm2, %v1996_v27, %v2004_v61 }
 0xa76   :  { %v2009_v39 = vsel %vm2001_vm1, %v1997_v11, %v2005_v49 }
 0xa77   :  { %2118 = vmatprep.mubr.f32.mxu1 %v2009_v39 }
 0xa78   :  { %2119 = vmatmul.mubr.f32.gmra.mxu1 %v2008_v36 }
 0xb34   :  { %v2508_v38 = vpop.f32.mrf.mxu1 }
 0xb36   :  { %v2509_v54 = vpop.f32.mrf.mxu1 }
 0xb37   :  { %v2510_v50 = vadd.f32 %v2509_v54, %v2508_v38 }
 0xb38   :  { %v2511_v42 = vpop.f32.mrf.mxu1 }
 0xb39   :  { %v2116_v15 = vadd.f32 %v2510_v50, %v2171_v10 }
 0xb3a   :  { %v2512_v13 = vpop.f32.mrf.mxu1 }
 0xb3b   :  { %2124 = vst [vmem:[#allocation10] sm:$0xff] %v2116_v15  ;;  %v2513_v24 = vadd.f32 %v2512_v13, %v2511_v42 }
 0xb3d   :  { %v2121_v33 = vadd.f32 %v2513_v24, %v2171_v10 }
 0xb3f   :  { %2125 = vst [vmem:[#allocation10 + $0x8] sm:$0xff] %v2121_v33 }
 0xb40   :  { %2665 = shalt.err (!%p2662_p10)
}
 0xb41   :  { %s2690_s5 = smov 128   ;;  %s2691_s9 = smov 8  }
 0xb42   :  { %2137 = dma.vmem_to_hbm [thread:$0]  %s2132_s29, 256, %s3625_s8, [#allocation4], %s2690_s5, %s2690_s5, %s2691_s9  }
 0xb43   :  { %2680 = dma.done.wait [#allocation4], 256  }
 0xb44   :  { %2681 = vsyncadd [#allocation4], 4294967040 }
 0xb45   :  { %2141 = vsyncpa [#allocation3], 1 }
 0xb46   :  { %2142 = vsyncpa [#allocation6], 1 }
 0xb47   :  { %2143 = vsyncpa [#allocation9], 1 }
 0xb48   :  { %2144 = vsyncpa [#allocation4], 1 }

</bundles_post_ra>
